<compile_context>
chip_gen: v6e
topology: v6e:2x2x1
jax: 0.10.0
libtpu: 0.0.40
codegen_flags: <defaults>
</compile_context>

<pallas_src>
import jax
import jax.numpy as jnp
from jax.experimental import pallas as pl
from jax.experimental.pallas import tpu as pltpu  # noqa: F401  (TPU backend import)


# ------------------------------ fused kernel ---------------------------------

def _make_fused_kernel(T, B, H, num_layers):
    """Kernel closure over static shapes. Refs (in order):
       x_tm, [w_ih_t, w_hh_t, bias] * num_layers, w_lin_t, b_lin, out."""

    def kernel(*refs):
        x_ref = refs[0]
        lstm_refs = []
        idx = 1
        for _ in range(num_layers):
            lstm_refs.append((refs[idx], refs[idx + 1], refs[idx + 2]))
            idx += 3
        wlin_ref = refs[idx]
        blin_ref = refs[idx + 1]
        out_ref = refs[idx + 2]

        # Time-major flat sequence: row t*B + b.
        seq = x_ref[...]                                   # (T*B, Fin)

        for (wih_ref, whh_ref, b_ref) in lstm_refs:
            whh = whh_ref[...]                             # (H, 4H)

            # Hoisted input projection + bias: ONE big MXU matmul per layer.
            gates_x = (
                jnp.dot(seq, wih_ref[...], preferred_element_type=jnp.float32)
                + b_ref[...]
            )                                              # (T*B, 4H)

            h = jnp.zeros((B, H), jnp.float32)
            c = jnp.zeros((B, H), jnp.float32)
            h_steps = []
            for t in range(T):                             # static, fully unrolled
                g = gates_x[t * B:(t + 1) * B, :] + jnp.dot(
                    h, whh, preferred_element_type=jnp.float32)   # (B, 4H)

                # Batched activations over the full 4H-lane gate block
                # (2 EUP passes instead of 4), then lane slices. Gate order i|f|g|o.
                sig = jax.nn.sigmoid(g)
                tnh = jnp.tanh(g)
                i_g = sig[:, 0 * H:1 * H]
                f_g = sig[:, 1 * H:2 * H]
                g_g = tnh[:, 2 * H:3 * H]
                o_g = sig[:, 3 * H:4 * H]

                c = f_g * c + i_g * g_g
                h = o_g * jnp.tanh(c)
                h_steps.append(h)

            seq = jnp.concatenate(h_steps, axis=0)         # (T*B, H), time-major

        # Linear head, reproducing the PyTorch indexing:
        #   output (B,T,H) -> reshape(-1,H) -> linear -> reshape(T,B,-1)[-1]
        # selects batch-first flat rows r = (T-1)*B + j, j in [0, B), i.e.
        # (b, t) = (r // T, r % T); in the time-major seq that is row t*B + b.
        rows = []
        for j in range(B):
            r = (T - 1) * B + j
            b_j, t_j = r // T, r % T
            rr = t_j * B + b_j
            rows.append(seq[rr:rr + 1, :])                 # (1, H), static slice
        sel = jnp.concatenate(rows, axis=0)                # (B, H)

        out_ref[...] = (
            jnp.dot(sel, wlin_ref[...], preferred_element_type=jnp.float32)
            + blin_ref[...]
        )                                                  # (B, O)

    return kernel


# ------------------------------ model wrapper ---------------------------------

def model_forward(params, x):
    """x: (B, T, F) float32 (batch_first, hidden=None).  Returns (B, O)."""
    B, T, F = x.shape
    H = params["lstm"][0]["w_hh_t"].shape[0]
    O = params["linear"]["w_t"].shape[1]
    num_layers = len(params["lstm"])

    # Tiny one-off layout change so per-timestep slices are contiguous in-kernel.
    x_tm = jnp.transpose(x, (1, 0, 2)).reshape(T * B, F)

    in_arrays = [x_tm]
    in_specs = [pl.BlockSpec((T * B, F), lambda: (0, 0))]
    for lp in params["lstm"]:
        fin = lp["w_ih_t"].shape[0]
        in_arrays += [lp["w_ih_t"], lp["w_hh_t"], lp["bias"]]
        in_specs += [
            pl.BlockSpec((fin, 4 * H), lambda: (0, 0)),
            pl.BlockSpec((H, 4 * H), lambda: (0, 0)),
            pl.BlockSpec((1, 4 * H), lambda: (0, 0)),
        ]
    in_arrays += [params["linear"]["w_t"], params["linear"]["bias"]]
    in_specs += [
        pl.BlockSpec((H, O), lambda: (0, 0)),
        pl.BlockSpec((1, O), lambda: (0, 0)),
    ]

    kernel = _make_fused_kernel(T, B, H, num_layers)
    return pl.pallas_call(
        kernel,
        out_shape=jax.ShapeDtypeStruct((B, O), jnp.float32),
        in_specs=in_specs,
        out_specs=pl.BlockSpec((B, O), lambda: (0, 0)),
    )(*in_arrays)


model_forward_jit = jax.jit(model_forward)


# ------------------------------ params / reference ----------------------------

def init_params(key, feature_size, hidden_size, num_layers, output_size):
    """Deterministic init mimicking PyTorch's U(-1/sqrt(H), 1/sqrt(H))."""
    params = {"lstm": [], "linear": {}}
    k = 1.0 / jnp.sqrt(jnp.float32(hidden_size))
    for layer in range(num_layers):
        in_sz = feature_size if layer == 0 else hidden_size
        key, k1, k2, k3, k4 = jax.random.split(key, 5)
        w_ih = jax.random.uniform(k1, (4 * hidden_size, in_sz), jnp.float32, -k, k)
        w_hh = jax.random.uniform(k2, (4 * hidden_size, hidden_size), jnp.float32, -k, k)
        b_ih = jax.random.uniform(k3, (4 * hidden_size,), jnp.float32, -k, k)
        b_hh = jax.random.uniform(k4, (4 * hidden_size,), jnp.float32, -k, k)
        params["lstm"].append({
            "w_ih_t": w_ih.T,                                    # (in, 4H)
            "w_hh_t": w_hh.T,                                    # (H, 4H)
            "bias": (b_ih + b_hh).reshape(1, 4 * hidden_size),   # (1, 4H)
        })
    key, k1, k2 = jax.random.split(key, 3)
    w = jax.random.uniform(k1, (output_size, hidden_size), jnp.float32, -k, k)
    b = jax.random.uniform(k2, (output_size,), jnp.float32, -k, k)
    params["linear"] = {"w_t": w.T, "bias": b.reshape(1, output_size)}
    return params


def _reference_forward(params, x):
    """Pure-JAX reference of Model.forward (hidden=None) for correctness check."""
    B, T, F = x.shape
    seq = x                                                   # (B, T, F)
    for lp in params["lstm"]:
        H = lp["w_hh_t"].shape[0]
        wih_t, whh_t, bias = lp["w_ih_t"], lp["w_hh_t"], lp["bias"]

        def step(carry, x_t):
            h, c = carry
            g = x_t @ wih_t + h @ whh_t + bias[0]
            i = jax.nn.sigmoid(g[:, :H])
            f = jax.nn.sigmoid(g[:, H:2 * H])
            gg = jnp.tanh(g[:, 2 * H:3 * H])
            o = jax.nn.sigmoid(g[:, 3 * H:])
            c = f * c + i * gg
            h = o * jnp.tanh(c)
            return (h, c), h

        h0 = jnp.zeros((B, H), jnp.float32)
        c0 = jnp.zeros((B, H), jnp.float32)
        _, hs = jax.lax.scan(step, (h0, c0), jnp.transpose(seq, (1, 0, 2)))
        seq = jnp.transpose(hs, (1, 0, 2))                    # (B, T, H)
    H = seq.shape[-1]
    flat = seq.reshape(-1, H)
    lin = flat @ params["linear"]["w_t"] + params["linear"]["bias"]
    lin = lin.reshape(T, B, -1)
    return lin[-1]


# ------------------------------------ main ------------------------------------

if __name__ == "__main__":
    feature_size, hidden_size, num_layers, output_size = 8, 32, 2, 4
    batch, seq_len = 2, 8

    key = jax.random.PRNGKey(0)
    key_x, key_p = jax.random.split(key)
    x = jax.random.normal(key_x, (batch, seq_len, feature_size), dtype=jnp.float32)
    params = init_params(key_p, feature_size, hidden_size, num_layers, output_size)

    out = model_forward_jit(params, x)
    jax.block_until_ready(out)
    assert out.shape == (batch, output_size)

    ref = _reference_forward(params, x)
    assert jnp.allclose(out, ref, atol=1e-3, rtol=1e-3), "kernel != reference"

    print("KERNEL_OK")
</pallas_src>

<mosaic_0001>
module attributes {stable_mosaic.version = 11 : i64} {
  func.func @kernel(%arg0: memref<16x8xf32, #tpu.memory_space<vmem>>, %arg1: memref<8x128xf32, #tpu.memory_space<vmem>>, %arg2: memref<32x128xf32, #tpu.memory_space<vmem>>, %arg3: memref<1x128xf32, #tpu.memory_space<vmem>>, %arg4: memref<32x128xf32, #tpu.memory_space<vmem>>, %arg5: memref<32x128xf32, #tpu.memory_space<vmem>>, %arg6: memref<1x128xf32, #tpu.memory_space<vmem>>, %arg7: memref<32x4xf32, #tpu.memory_space<vmem>>, %arg8: memref<1x4xf32, #tpu.memory_space<vmem>>, %arg9: memref<2x4xf32, #tpu.memory_space<vmem>>) attributes {dimension_semantics = [], scalar_prefetch = 0 : i64, scratch_operands = 0 : i64, tpu.core_type = #tpu.core_type<tc>} {
    %c0 = arith.constant 0 : index
    %c0_0 = arith.constant 0 : index
    %0 = vector.load %arg0[%c0, %c0_0] : memref<16x8xf32, #tpu.memory_space<vmem>>, vector<16x8xf32>
    %c0_1 = arith.constant 0 : index
    %c0_2 = arith.constant 0 : index
    %1 = vector.load %arg2[%c0_1, %c0_2] : memref<32x128xf32, #tpu.memory_space<vmem>>, vector<32x128xf32>
    %c0_3 = arith.constant 0 : index
    %c0_4 = arith.constant 0 : index
    %2 = vector.load %arg1[%c0_3, %c0_4] : memref<8x128xf32, #tpu.memory_space<vmem>>, vector<8x128xf32>
    %cst = arith.constant dense<0.000000e+00> : vector<16x128xf32>
    %3 = tpu.matmul %0, %2, %cst {dimension_numbers = #tpu.dot_dimension_numbers<[1], [0], [0], [1], [0, 0, 1, 1], [], []>} : vector<16x8xf32>, vector<8x128xf32>, vector<16x128xf32> -> vector<16x128xf32>
    %c0_5 = arith.constant 0 : index
    %c0_6 = arith.constant 0 : index
    %4 = vector.load %arg3[%c0_5, %c0_6] : memref<1x128xf32, #tpu.memory_space<vmem>>, vector<1x128xf32>
    %5 = vector.broadcast %4 : vector<1x128xf32> to vector<16x128xf32>
    %6 = arith.addf %3, %5 : vector<16x128xf32>
    %cst_7 = arith.constant 0.000000e+00 : f32
    %7 = vector.broadcast %cst_7 : f32 to vector<2x32xf32>
    %cst_8 = arith.constant 0.000000e+00 : f32
    %8 = vector.broadcast %cst_8 : f32 to vector<2x32xf32>
    %9 = vector.extract_strided_slice %6 {offsets = [0, 0], sizes = [2, 128], strides = [1, 1]} : vector<16x128xf32> to vector<2x128xf32>
    %cst_9 = arith.constant dense<0.000000e+00> : vector<2x128xf32>
    %10 = tpu.matmul %7, %1, %cst_9 {dimension_numbers = #tpu.dot_dimension_numbers<[1], [0], [0], [1], [0, 0, 1, 1], [], []>} : vector<2x32xf32>, vector<32x128xf32>, vector<2x128xf32> -> vector<2x128xf32>
    %11 = arith.addf %9, %10 : vector<2x128xf32>
    %12 = arith.negf %11 : vector<2x128xf32>
    %13 = math.exp %12 : vector<2x128xf32>
    %cst_10 = arith.constant 1.000000e+00 : f32
    %14 = vector.broadcast %cst_10 : f32 to vector<2x128xf32>
    %15 = arith.addf %14, %13 : vector<2x128xf32>
    %16 = arith.divf %14, %15 : vector<2x128xf32>
    %17 = math.tanh %11 : vector<2x128xf32>
    %18 = vector.extract_strided_slice %16 {offsets = [0, 0], sizes = [2, 32], strides = [1, 1]} : vector<2x128xf32> to vector<2x32xf32>
    %19 = vector.extract_strided_slice %16 {offsets = [0, 32], sizes = [2, 32], strides = [1, 1]} : vector<2x128xf32> to vector<2x32xf32>
    %20 = vector.extract_strided_slice %17 {offsets = [0, 64], sizes = [2, 32], strides = [1, 1]} : vector<2x128xf32> to vector<2x32xf32>
    %21 = vector.extract_strided_slice %16 {offsets = [0, 96], sizes = [2, 32], strides = [1, 1]} : vector<2x128xf32> to vector<2x32xf32>
    %22 = arith.mulf %19, %8 : vector<2x32xf32>
    %23 = arith.mulf %18, %20 : vector<2x32xf32>
    %24 = arith.addf %22, %23 : vector<2x32xf32>
    %25 = math.tanh %24 : vector<2x32xf32>
    %26 = arith.mulf %21, %25 : vector<2x32xf32>
    %27 = vector.extract_strided_slice %6 {offsets = [2, 0], sizes = [2, 128], strides = [1, 1]} : vector<16x128xf32> to vector<2x128xf32>
    %cst_11 = arith.constant dense<0.000000e+00> : vector<2x128xf32>
    %28 = tpu.matmul %26, %1, %cst_11 {dimension_numbers = #tpu.dot_dimension_numbers<[1], [0], [0], [1], [0, 0, 1, 1], [], []>} : vector<2x32xf32>, vector<32x128xf32>, vector<2x128xf32> -> vector<2x128xf32>
    %29 = arith.addf %27, %28 : vector<2x128xf32>
    %30 = arith.negf %29 : vector<2x128xf32>
    %31 = math.exp %30 : vector<2x128xf32>
    %cst_12 = arith.constant 1.000000e+00 : f32
    %32 = vector.broadcast %cst_12 : f32 to vector<2x128xf32>
    %33 = arith.addf %32, %31 : vector<2x128xf32>
    %34 = arith.divf %32, %33 : vector<2x128xf32>
    %35 = math.tanh %29 : vector<2x128xf32>
    %36 = vector.extract_strided_slice %34 {offsets = [0, 0], sizes = [2, 32], strides = [1, 1]} : vector<2x128xf32> to vector<2x32xf32>
    %37 = vector.extract_strided_slice %34 {offsets = [0, 32], sizes = [2, 32], strides = [1, 1]} : vector<2x128xf32> to vector<2x32xf32>
    %38 = vector.extract_strided_slice %35 {offsets = [0, 64], sizes = [2, 32], strides = [1, 1]} : vector<2x128xf32> to vector<2x32xf32>
    %39 = vector.extract_strided_slice %34 {offsets = [0, 96], sizes = [2, 32], strides = [1, 1]} : vector<2x128xf32> to vector<2x32xf32>
    %40 = arith.mulf %37, %24 : vector<2x32xf32>
    %41 = arith.mulf %36, %38 : vector<2x32xf32>
    %42 = arith.addf %40, %41 : vector<2x32xf32>
    %43 = math.tanh %42 : vector<2x32xf32>
    %44 = arith.mulf %39, %43 : vector<2x32xf32>
    %45 = vector.extract_strided_slice %6 {offsets = [4, 0], sizes = [2, 128], strides = [1, 1]} : vector<16x128xf32> to vector<2x128xf32>
    %cst_13 = arith.constant dense<0.000000e+00> : vector<2x128xf32>
    %46 = tpu.matmul %44, %1, %cst_13 {dimension_numbers = #tpu.dot_dimension_numbers<[1], [0], [0], [1], [0, 0, 1, 1], [], []>} : vector<2x32xf32>, vector<32x128xf32>, vector<2x128xf32> -> vector<2x128xf32>
    %47 = arith.addf %45, %46 : vector<2x128xf32>
    %48 = arith.negf %47 : vector<2x128xf32>
    %49 = math.exp %48 : vector<2x128xf32>
    %cst_14 = arith.constant 1.000000e+00 : f32
    %50 = vector.broadcast %cst_14 : f32 to vector<2x128xf32>
    %51 = arith.addf %50, %49 : vector<2x128xf32>
    %52 = arith.divf %50, %51 : vector<2x128xf32>
    %53 = math.tanh %47 : vector<2x128xf32>
    %54 = vector.extract_strided_slice %52 {offsets = [0, 0], sizes = [2, 32], strides = [1, 1]} : vector<2x128xf32> to vector<2x32xf32>
    %55 = vector.extract_strided_slice %52 {offsets = [0, 32], sizes = [2, 32], strides = [1, 1]} : vector<2x128xf32> to vector<2x32xf32>
    %56 = vector.extract_strided_slice %53 {offsets = [0, 64], sizes = [2, 32], strides = [1, 1]} : vector<2x128xf32> to vector<2x32xf32>
    %57 = vector.extract_strided_slice %52 {offsets = [0, 96], sizes = [2, 32], strides = [1, 1]} : vector<2x128xf32> to vector<2x32xf32>
    %58 = arith.mulf %55, %42 : vector<2x32xf32>
    %59 = arith.mulf %54, %56 : vector<2x32xf32>
    %60 = arith.addf %58, %59 : vector<2x32xf32>
    %61 = math.tanh %60 : vector<2x32xf32>
    %62 = arith.mulf %57, %61 : vector<2x32xf32>
    %63 = vector.extract_strided_slice %6 {offsets = [6, 0], sizes = [2, 128], strides = [1, 1]} : vector<16x128xf32> to vector<2x128xf32>
    %cst_15 = arith.constant dense<0.000000e+00> : vector<2x128xf32>
    %64 = tpu.matmul %62, %1, %cst_15 {dimension_numbers = #tpu.dot_dimension_numbers<[1], [0], [0], [1], [0, 0, 1, 1], [], []>} : vector<2x32xf32>, vector<32x128xf32>, vector<2x128xf32> -> vector<2x128xf32>
    %65 = arith.addf %63, %64 : vector<2x128xf32>
    %66 = arith.negf %65 : vector<2x128xf32>
    %67 = math.exp %66 : vector<2x128xf32>
    %cst_16 = arith.constant 1.000000e+00 : f32
    %68 = vector.broadcast %cst_16 : f32 to vector<2x128xf32>
    %69 = arith.addf %68, %67 : vector<2x128xf32>
    %70 = arith.divf %68, %69 : vector<2x128xf32>
    %71 = math.tanh %65 : vector<2x128xf32>
    %72 = vector.extract_strided_slice %70 {offsets = [0, 0], sizes = [2, 32], strides = [1, 1]} : vector<2x128xf32> to vector<2x32xf32>
    %73 = vector.extract_strided_slice %70 {offsets = [0, 32], sizes = [2, 32], strides = [1, 1]} : vector<2x128xf32> to vector<2x32xf32>
    %74 = vector.extract_strided_slice %71 {offsets = [0, 64], sizes = [2, 32], strides = [1, 1]} : vector<2x128xf32> to vector<2x32xf32>
    %75 = vector.extract_strided_slice %70 {offsets = [0, 96], sizes = [2, 32], strides = [1, 1]} : vector<2x128xf32> to vector<2x32xf32>
    %76 = arith.mulf %73, %60 : vector<2x32xf32>
    %77 = arith.mulf %72, %74 : vector<2x32xf32>
    %78 = arith.addf %76, %77 : vector<2x32xf32>
    %79 = math.tanh %78 : vector<2x32xf32>
    %80 = arith.mulf %75, %79 : vector<2x32xf32>
    %81 = vector.extract_strided_slice %6 {offsets = [8, 0], sizes = [2, 128], strides = [1, 1]} : vector<16x128xf32> to vector<2x128xf32>
    %cst_17 = arith.constant dense<0.000000e+00> : vector<2x128xf32>
    %82 = tpu.matmul %80, %1, %cst_17 {dimension_numbers = #tpu.dot_dimension_numbers<[1], [0], [0], [1], [0, 0, 1, 1], [], []>} : vector<2x32xf32>, vector<32x128xf32>, vector<2x128xf32> -> vector<2x128xf32>
    %83 = arith.addf %81, %82 : vector<2x128xf32>
    %84 = arith.negf %83 : vector<2x128xf32>
    %85 = math.exp %84 : vector<2x128xf32>
    %cst_18 = arith.constant 1.000000e+00 : f32
    %86 = vector.broadcast %cst_18 : f32 to vector<2x128xf32>
    %87 = arith.addf %86, %85 : vector<2x128xf32>
    %88 = arith.divf %86, %87 : vector<2x128xf32>
    %89 = math.tanh %83 : vector<2x128xf32>
    %90 = vector.extract_strided_slice %88 {offsets = [0, 0], sizes = [2, 32], strides = [1, 1]} : vector<2x128xf32> to vector<2x32xf32>
    %91 = vector.extract_strided_slice %88 {offsets = [0, 32], sizes = [2, 32], strides = [1, 1]} : vector<2x128xf32> to vector<2x32xf32>
    %92 = vector.extract_strided_slice %89 {offsets = [0, 64], sizes = [2, 32], strides = [1, 1]} : vector<2x128xf32> to vector<2x32xf32>
    %93 = vector.extract_strided_slice %88 {offsets = [0, 96], sizes = [2, 32], strides = [1, 1]} : vector<2x128xf32> to vector<2x32xf32>
    %94 = arith.mulf %91, %78 : vector<2x32xf32>
    %95 = arith.mulf %90, %92 : vector<2x32xf32>
    %96 = arith.addf %94, %95 : vector<2x32xf32>
    %97 = math.tanh %96 : vector<2x32xf32>
    %98 = arith.mulf %93, %97 : vector<2x32xf32>
    %99 = vector.extract_strided_slice %6 {offsets = [10, 0], sizes = [2, 128], strides = [1, 1]} : vector<16x128xf32> to vector<2x128xf32>
    %cst_19 = arith.constant dense<0.000000e+00> : vector<2x128xf32>
    %100 = tpu.matmul %98, %1, %cst_19 {dimension_numbers = #tpu.dot_dimension_numbers<[1], [0], [0], [1], [0, 0, 1, 1], [], []>} : vector<2x32xf32>, vector<32x128xf32>, vector<2x128xf32> -> vector<2x128xf32>
    %101 = arith.addf %99, %100 : vector<2x128xf32>
    %102 = arith.negf %101 : vector<2x128xf32>
    %103 = math.exp %102 : vector<2x128xf32>
    %cst_20 = arith.constant 1.000000e+00 : f32
    %104 = vector.broadcast %cst_20 : f32 to vector<2x128xf32>
    %105 = arith.addf %104, %103 : vector<2x128xf32>
    %106 = arith.divf %104, %105 : vector<2x128xf32>
    %107 = math.tanh %101 : vector<2x128xf32>
    %108 = vector.extract_strided_slice %106 {offsets = [0, 0], sizes = [2, 32], strides = [1, 1]} : vector<2x128xf32> to vector<2x32xf32>
    %109 = vector.extract_strided_slice %106 {offsets = [0, 32], sizes = [2, 32], strides = [1, 1]} : vector<2x128xf32> to vector<2x32xf32>
    %110 = vector.extract_strided_slice %107 {offsets = [0, 64], sizes = [2, 32], strides = [1, 1]} : vector<2x128xf32> to vector<2x32xf32>
    %111 = vector.extract_strided_slice %106 {offsets = [0, 96], sizes = [2, 32], strides = [1, 1]} : vector<2x128xf32> to vector<2x32xf32>
    %112 = arith.mulf %109, %96 : vector<2x32xf32>
    %113 = arith.mulf %108, %110 : vector<2x32xf32>
    %114 = arith.addf %112, %113 : vector<2x32xf32>
    %115 = math.tanh %114 : vector<2x32xf32>
    %116 = arith.mulf %111, %115 : vector<2x32xf32>
    %117 = vector.extract_strided_slice %6 {offsets = [12, 0], sizes = [2, 128], strides = [1, 1]} : vector<16x128xf32> to vector<2x128xf32>
    %cst_21 = arith.constant dense<0.000000e+00> : vector<2x128xf32>
    %118 = tpu.matmul %116, %1, %cst_21 {dimension_numbers = #tpu.dot_dimension_numbers<[1], [0], [0], [1], [0, 0, 1, 1], [], []>} : vector<2x32xf32>, vector<32x128xf32>, vector<2x128xf32> -> vector<2x128xf32>
    %119 = arith.addf %117, %118 : vector<2x128xf32>
    %120 = arith.negf %119 : vector<2x128xf32>
    %121 = math.exp %120 : vector<2x128xf32>
    %cst_22 = arith.constant 1.000000e+00 : f32
    %122 = vector.broadcast %cst_22 : f32 to vector<2x128xf32>
    %123 = arith.addf %122, %121 : vector<2x128xf32>
    %124 = arith.divf %122, %123 : vector<2x128xf32>
    %125 = math.tanh %119 : vector<2x128xf32>
    %126 = vector.extract_strided_slice %124 {offsets = [0, 0], sizes = [2, 32], strides = [1, 1]} : vector<2x128xf32> to vector<2x32xf32>
    %127 = vector.extract_strided_slice %124 {offsets = [0, 32], sizes = [2, 32], strides = [1, 1]} : vector<2x128xf32> to vector<2x32xf32>
    %128 = vector.extract_strided_slice %125 {offsets = [0, 64], sizes = [2, 32], strides = [1, 1]} : vector<2x128xf32> to vector<2x32xf32>
    %129 = vector.extract_strided_slice %124 {offsets = [0, 96], sizes = [2, 32], strides = [1, 1]} : vector<2x128xf32> to vector<2x32xf32>
    %130 = arith.mulf %127, %114 : vector<2x32xf32>
    %131 = arith.mulf %126, %128 : vector<2x32xf32>
    %132 = arith.addf %130, %131 : vector<2x32xf32>
    %133 = math.tanh %132 : vector<2x32xf32>
    %134 = arith.mulf %129, %133 : vector<2x32xf32>
    %135 = vector.extract_strided_slice %6 {offsets = [14, 0], sizes = [2, 128], strides = [1, 1]} : vector<16x128xf32> to vector<2x128xf32>
    %cst_23 = arith.constant dense<0.000000e+00> : vector<2x128xf32>
    %136 = tpu.matmul %134, %1, %cst_23 {dimension_numbers = #tpu.dot_dimension_numbers<[1], [0], [0], [1], [0, 0, 1, 1], [], []>} : vector<2x32xf32>, vector<32x128xf32>, vector<2x128xf32> -> vector<2x128xf32>
    %137 = arith.addf %135, %136 : vector<2x128xf32>
    %138 = arith.negf %137 : vector<2x128xf32>
    %139 = math.exp %138 : vector<2x128xf32>
    %cst_24 = arith.constant 1.000000e+00 : f32
    %140 = vector.broadcast %cst_24 : f32 to vector<2x128xf32>
    %141 = arith.addf %140, %139 : vector<2x128xf32>
    %142 = arith.divf %140, %141 : vector<2x128xf32>
    %143 = math.tanh %137 : vector<2x128xf32>
    %144 = vector.extract_strided_slice %142 {offsets = [0, 0], sizes = [2, 32], strides = [1, 1]} : vector<2x128xf32> to vector<2x32xf32>
    %145 = vector.extract_strided_slice %142 {offsets = [0, 32], sizes = [2, 32], strides = [1, 1]} : vector<2x128xf32> to vector<2x32xf32>
    %146 = vector.extract_strided_slice %143 {offsets = [0, 64], sizes = [2, 32], strides = [1, 1]} : vector<2x128xf32> to vector<2x32xf32>
    %147 = vector.extract_strided_slice %142 {offsets = [0, 96], sizes = [2, 32], strides = [1, 1]} : vector<2x128xf32> to vector<2x32xf32>
    %148 = arith.mulf %145, %132 : vector<2x32xf32>
    %149 = arith.mulf %144, %146 : vector<2x32xf32>
    %150 = arith.addf %148, %149 : vector<2x32xf32>
    %151 = math.tanh %150 : vector<2x32xf32>
    %152 = arith.mulf %147, %151 : vector<2x32xf32>
    %153 = tpu.concatenate %26, %44, %62, %80, %98, %116, %134, %152 in 0 : vector<2x32xf32>, vector<2x32xf32>, vector<2x32xf32>, vector<2x32xf32>, vector<2x32xf32>, vector<2x32xf32>, vector<2x32xf32>, vector<2x32xf32> -> vector<16x32xf32>
    %c0_25 = arith.constant 0 : index
    %c0_26 = arith.constant 0 : index
    %154 = vector.load %arg5[%c0_25, %c0_26] : memref<32x128xf32, #tpu.memory_space<vmem>>, vector<32x128xf32>
    %c0_27 = arith.constant 0 : index
    %c0_28 = arith.constant 0 : index
    %155 = vector.load %arg4[%c0_27, %c0_28] : memref<32x128xf32, #tpu.memory_space<vmem>>, vector<32x128xf32>
    %cst_29 = arith.constant dense<0.000000e+00> : vector<16x128xf32>
    %156 = tpu.matmul %153, %155, %cst_29 {dimension_numbers = #tpu.dot_dimension_numbers<[1], [0], [0], [1], [0, 0, 1, 1], [], []>} : vector<16x32xf32>, vector<32x128xf32>, vector<16x128xf32> -> vector<16x128xf32>
    %c0_30 = arith.constant 0 : index
    %c0_31 = arith.constant 0 : index
    %157 = vector.load %arg6[%c0_30, %c0_31] : memref<1x128xf32, #tpu.memory_space<vmem>>, vector<1x128xf32>
    %158 = vector.broadcast %157 : vector<1x128xf32> to vector<16x128xf32>
    %159 = arith.addf %156, %158 : vector<16x128xf32>
    %cst_32 = arith.constant 0.000000e+00 : f32
    %160 = vector.broadcast %cst_32 : f32 to vector<2x32xf32>
    %cst_33 = arith.constant 0.000000e+00 : f32
    %161 = vector.broadcast %cst_33 : f32 to vector<2x32xf32>
    %162 = vector.extract_strided_slice %159 {offsets = [0, 0], sizes = [2, 128], strides = [1, 1]} : vector<16x128xf32> to vector<2x128xf32>
    %cst_34 = arith.constant dense<0.000000e+00> : vector<2x128xf32>
    %163 = tpu.matmul %160, %154, %cst_34 {dimension_numbers = #tpu.dot_dimension_numbers<[1], [0], [0], [1], [0, 0, 1, 1], [], []>} : vector<2x32xf32>, vector<32x128xf32>, vector<2x128xf32> -> vector<2x128xf32>
    %164 = arith.addf %162, %163 : vector<2x128xf32>
    %165 = arith.negf %164 : vector<2x128xf32>
    %166 = math.exp %165 : vector<2x128xf32>
    %cst_35 = arith.constant 1.000000e+00 : f32
    %167 = vector.broadcast %cst_35 : f32 to vector<2x128xf32>
    %168 = arith.addf %167, %166 : vector<2x128xf32>
    %169 = arith.divf %167, %168 : vector<2x128xf32>
    %170 = math.tanh %164 : vector<2x128xf32>
    %171 = vector.extract_strided_slice %169 {offsets = [0, 0], sizes = [2, 32], strides = [1, 1]} : vector<2x128xf32> to vector<2x32xf32>
    %172 = vector.extract_strided_slice %169 {offsets = [0, 32], sizes = [2, 32], strides = [1, 1]} : vector<2x128xf32> to vector<2x32xf32>
    %173 = vector.extract_strided_slice %170 {offsets = [0, 64], sizes = [2, 32], strides = [1, 1]} : vector<2x128xf32> to vector<2x32xf32>
    %174 = vector.extract_strided_slice %169 {offsets = [0, 96], sizes = [2, 32], strides = [1, 1]} : vector<2x128xf32> to vector<2x32xf32>
    %175 = arith.mulf %172, %161 : vector<2x32xf32>
    %176 = arith.mulf %171, %173 : vector<2x32xf32>
    %177 = arith.addf %175, %176 : vector<2x32xf32>
    %178 = math.tanh %177 : vector<2x32xf32>
    %179 = arith.mulf %174, %178 : vector<2x32xf32>
    %180 = vector.extract_strided_slice %159 {offsets = [2, 0], sizes = [2, 128], strides = [1, 1]} : vector<16x128xf32> to vector<2x128xf32>
    %cst_36 = arith.constant dense<0.000000e+00> : vector<2x128xf32>
    %181 = tpu.matmul %179, %154, %cst_36 {dimension_numbers = #tpu.dot_dimension_numbers<[1], [0], [0], [1], [0, 0, 1, 1], [], []>} : vector<2x32xf32>, vector<32x128xf32>, vector<2x128xf32> -> vector<2x128xf32>
    %182 = arith.addf %180, %181 : vector<2x128xf32>
    %183 = arith.negf %182 : vector<2x128xf32>
    %184 = math.exp %183 : vector<2x128xf32>
    %cst_37 = arith.constant 1.000000e+00 : f32
    %185 = vector.broadcast %cst_37 : f32 to vector<2x128xf32>
    %186 = arith.addf %185, %184 : vector<2x128xf32>
    %187 = arith.divf %185, %186 : vector<2x128xf32>
    %188 = math.tanh %182 : vector<2x128xf32>
    %189 = vector.extract_strided_slice %187 {offsets = [0, 0], sizes = [2, 32], strides = [1, 1]} : vector<2x128xf32> to vector<2x32xf32>
    %190 = vector.extract_strided_slice %187 {offsets = [0, 32], sizes = [2, 32], strides = [1, 1]} : vector<2x128xf32> to vector<2x32xf32>
    %191 = vector.extract_strided_slice %188 {offsets = [0, 64], sizes = [2, 32], strides = [1, 1]} : vector<2x128xf32> to vector<2x32xf32>
    %192 = vector.extract_strided_slice %187 {offsets = [0, 96], sizes = [2, 32], strides = [1, 1]} : vector<2x128xf32> to vector<2x32xf32>
    %193 = arith.mulf %190, %177 : vector<2x32xf32>
    %194 = arith.mulf %189, %191 : vector<2x32xf32>
    %195 = arith.addf %193, %194 : vector<2x32xf32>
    %196 = math.tanh %195 : vector<2x32xf32>
    %197 = arith.mulf %192, %196 : vector<2x32xf32>
    %198 = vector.extract_strided_slice %159 {offsets = [4, 0], sizes = [2, 128], strides = [1, 1]} : vector<16x128xf32> to vector<2x128xf32>
    %cst_38 = arith.constant dense<0.000000e+00> : vector<2x128xf32>
    %199 = tpu.matmul %197, %154, %cst_38 {dimension_numbers = #tpu.dot_dimension_numbers<[1], [0], [0], [1], [0, 0, 1, 1], [], []>} : vector<2x32xf32>, vector<32x128xf32>, vector<2x128xf32> -> vector<2x128xf32>
    %200 = arith.addf %198, %199 : vector<2x128xf32>
    %201 = arith.negf %200 : vector<2x128xf32>
    %202 = math.exp %201 : vector<2x128xf32>
    %cst_39 = arith.constant 1.000000e+00 : f32
    %203 = vector.broadcast %cst_39 : f32 to vector<2x128xf32>
    %204 = arith.addf %203, %202 : vector<2x128xf32>
    %205 = arith.divf %203, %204 : vector<2x128xf32>
    %206 = math.tanh %200 : vector<2x128xf32>
    %207 = vector.extract_strided_slice %205 {offsets = [0, 0], sizes = [2, 32], strides = [1, 1]} : vector<2x128xf32> to vector<2x32xf32>
    %208 = vector.extract_strided_slice %205 {offsets = [0, 32], sizes = [2, 32], strides = [1, 1]} : vector<2x128xf32> to vector<2x32xf32>
    %209 = vector.extract_strided_slice %206 {offsets = [0, 64], sizes = [2, 32], strides = [1, 1]} : vector<2x128xf32> to vector<2x32xf32>
    %210 = vector.extract_strided_slice %205 {offsets = [0, 96], sizes = [2, 32], strides = [1, 1]} : vector<2x128xf32> to vector<2x32xf32>
    %211 = arith.mulf %208, %195 : vector<2x32xf32>
    %212 = arith.mulf %207, %209 : vector<2x32xf32>
    %213 = arith.addf %211, %212 : vector<2x32xf32>
    %214 = math.tanh %213 : vector<2x32xf32>
    %215 = arith.mulf %210, %214 : vector<2x32xf32>
    %216 = vector.extract_strided_slice %159 {offsets = [6, 0], sizes = [2, 128], strides = [1, 1]} : vector<16x128xf32> to vector<2x128xf32>
    %cst_40 = arith.constant dense<0.000000e+00> : vector<2x128xf32>
    %217 = tpu.matmul %215, %154, %cst_40 {dimension_numbers = #tpu.dot_dimension_numbers<[1], [0], [0], [1], [0, 0, 1, 1], [], []>} : vector<2x32xf32>, vector<32x128xf32>, vector<2x128xf32> -> vector<2x128xf32>
    %218 = arith.addf %216, %217 : vector<2x128xf32>
    %219 = arith.negf %218 : vector<2x128xf32>
    %220 = math.exp %219 : vector<2x128xf32>
    %cst_41 = arith.constant 1.000000e+00 : f32
    %221 = vector.broadcast %cst_41 : f32 to vector<2x128xf32>
    %222 = arith.addf %221, %220 : vector<2x128xf32>
    %223 = arith.divf %221, %222 : vector<2x128xf32>
    %224 = math.tanh %218 : vector<2x128xf32>
    %225 = vector.extract_strided_slice %223 {offsets = [0, 0], sizes = [2, 32], strides = [1, 1]} : vector<2x128xf32> to vector<2x32xf32>
    %226 = vector.extract_strided_slice %223 {offsets = [0, 32], sizes = [2, 32], strides = [1, 1]} : vector<2x128xf32> to vector<2x32xf32>
    %227 = vector.extract_strided_slice %224 {offsets = [0, 64], sizes = [2, 32], strides = [1, 1]} : vector<2x128xf32> to vector<2x32xf32>
    %228 = vector.extract_strided_slice %223 {offsets = [0, 96], sizes = [2, 32], strides = [1, 1]} : vector<2x128xf32> to vector<2x32xf32>
    %229 = arith.mulf %226, %213 : vector<2x32xf32>
    %230 = arith.mulf %225, %227 : vector<2x32xf32>
    %231 = arith.addf %229, %230 : vector<2x32xf32>
    %232 = math.tanh %231 : vector<2x32xf32>
    %233 = arith.mulf %228, %232 : vector<2x32xf32>
    %234 = vector.extract_strided_slice %159 {offsets = [8, 0], sizes = [2, 128], strides = [1, 1]} : vector<16x128xf32> to vector<2x128xf32>
    %cst_42 = arith.constant dense<0.000000e+00> : vector<2x128xf32>
    %235 = tpu.matmul %233, %154, %cst_42 {dimension_numbers = #tpu.dot_dimension_numbers<[1], [0], [0], [1], [0, 0, 1, 1], [], []>} : vector<2x32xf32>, vector<32x128xf32>, vector<2x128xf32> -> vector<2x128xf32>
    %236 = arith.addf %234, %235 : vector<2x128xf32>
    %237 = arith.negf %236 : vector<2x128xf32>
    %238 = math.exp %237 : vector<2x128xf32>
    %cst_43 = arith.constant 1.000000e+00 : f32
    %239 = vector.broadcast %cst_43 : f32 to vector<2x128xf32>
    %240 = arith.addf %239, %238 : vector<2x128xf32>
    %241 = arith.divf %239, %240 : vector<2x128xf32>
    %242 = math.tanh %236 : vector<2x128xf32>
    %243 = vector.extract_strided_slice %241 {offsets = [0, 0], sizes = [2, 32], strides = [1, 1]} : vector<2x128xf32> to vector<2x32xf32>
    %244 = vector.extract_strided_slice %241 {offsets = [0, 32], sizes = [2, 32], strides = [1, 1]} : vector<2x128xf32> to vector<2x32xf32>
    %245 = vector.extract_strided_slice %242 {offsets = [0, 64], sizes = [2, 32], strides = [1, 1]} : vector<2x128xf32> to vector<2x32xf32>
    %246 = vector.extract_strided_slice %241 {offsets = [0, 96], sizes = [2, 32], strides = [1, 1]} : vector<2x128xf32> to vector<2x32xf32>
    %247 = arith.mulf %244, %231 : vector<2x32xf32>
    %248 = arith.mulf %243, %245 : vector<2x32xf32>
    %249 = arith.addf %247, %248 : vector<2x32xf32>
    %250 = math.tanh %249 : vector<2x32xf32>
    %251 = arith.mulf %246, %250 : vector<2x32xf32>
    %252 = vector.extract_strided_slice %159 {offsets = [10, 0], sizes = [2, 128], strides = [1, 1]} : vector<16x128xf32> to vector<2x128xf32>
    %cst_44 = arith.constant dense<0.000000e+00> : vector<2x128xf32>
    %253 = tpu.matmul %251, %154, %cst_44 {dimension_numbers = #tpu.dot_dimension_numbers<[1], [0], [0], [1], [0, 0, 1, 1], [], []>} : vector<2x32xf32>, vector<32x128xf32>, vector<2x128xf32> -> vector<2x128xf32>
    %254 = arith.addf %252, %253 : vector<2x128xf32>
    %255 = arith.negf %254 : vector<2x128xf32>
    %256 = math.exp %255 : vector<2x128xf32>
    %cst_45 = arith.constant 1.000000e+00 : f32
    %257 = vector.broadcast %cst_45 : f32 to vector<2x128xf32>
    %258 = arith.addf %257, %256 : vector<2x128xf32>
    %259 = arith.divf %257, %258 : vector<2x128xf32>
    %260 = math.tanh %254 : vector<2x128xf32>
    %261 = vector.extract_strided_slice %259 {offsets = [0, 0], sizes = [2, 32], strides = [1, 1]} : vector<2x128xf32> to vector<2x32xf32>
    %262 = vector.extract_strided_slice %259 {offsets = [0, 32], sizes = [2, 32], strides = [1, 1]} : vector<2x128xf32> to vector<2x32xf32>
    %263 = vector.extract_strided_slice %260 {offsets = [0, 64], sizes = [2, 32], strides = [1, 1]} : vector<2x128xf32> to vector<2x32xf32>
    %264 = vector.extract_strided_slice %259 {offsets = [0, 96], sizes = [2, 32], strides = [1, 1]} : vector<2x128xf32> to vector<2x32xf32>
    %265 = arith.mulf %262, %249 : vector<2x32xf32>
    %266 = arith.mulf %261, %263 : vector<2x32xf32>
    %267 = arith.addf %265, %266 : vector<2x32xf32>
    %268 = math.tanh %267 : vector<2x32xf32>
    %269 = arith.mulf %264, %268 : vector<2x32xf32>
    %270 = vector.extract_strided_slice %159 {offsets = [12, 0], sizes = [2, 128], strides = [1, 1]} : vector<16x128xf32> to vector<2x128xf32>
    %cst_46 = arith.constant dense<0.000000e+00> : vector<2x128xf32>
    %271 = tpu.matmul %269, %154, %cst_46 {dimension_numbers = #tpu.dot_dimension_numbers<[1], [0], [0], [1], [0, 0, 1, 1], [], []>} : vector<2x32xf32>, vector<32x128xf32>, vector<2x128xf32> -> vector<2x128xf32>
    %272 = arith.addf %270, %271 : vector<2x128xf32>
    %273 = arith.negf %272 : vector<2x128xf32>
    %274 = math.exp %273 : vector<2x128xf32>
    %cst_47 = arith.constant 1.000000e+00 : f32
    %275 = vector.broadcast %cst_47 : f32 to vector<2x128xf32>
    %276 = arith.addf %275, %274 : vector<2x128xf32>
    %277 = arith.divf %275, %276 : vector<2x128xf32>
    %278 = math.tanh %272 : vector<2x128xf32>
    %279 = vector.extract_strided_slice %277 {offsets = [0, 0], sizes = [2, 32], strides = [1, 1]} : vector<2x128xf32> to vector<2x32xf32>
    %280 = vector.extract_strided_slice %277 {offsets = [0, 32], sizes = [2, 32], strides = [1, 1]} : vector<2x128xf32> to vector<2x32xf32>
    %281 = vector.extract_strided_slice %278 {offsets = [0, 64], sizes = [2, 32], strides = [1, 1]} : vector<2x128xf32> to vector<2x32xf32>
    %282 = vector.extract_strided_slice %277 {offsets = [0, 96], sizes = [2, 32], strides = [1, 1]} : vector<2x128xf32> to vector<2x32xf32>
    %283 = arith.mulf %280, %267 : vector<2x32xf32>
    %284 = arith.mulf %279, %281 : vector<2x32xf32>
    %285 = arith.addf %283, %284 : vector<2x32xf32>
    %286 = math.tanh %285 : vector<2x32xf32>
    %287 = arith.mulf %282, %286 : vector<2x32xf32>
    %288 = vector.extract_strided_slice %159 {offsets = [14, 0], sizes = [2, 128], strides = [1, 1]} : vector<16x128xf32> to vector<2x128xf32>
    %cst_48 = arith.constant dense<0.000000e+00> : vector<2x128xf32>
    %289 = tpu.matmul %287, %154, %cst_48 {dimension_numbers = #tpu.dot_dimension_numbers<[1], [0], [0], [1], [0, 0, 1, 1], [], []>} : vector<2x32xf32>, vector<32x128xf32>, vector<2x128xf32> -> vector<2x128xf32>
    %290 = arith.addf %288, %289 : vector<2x128xf32>
    %291 = arith.negf %290 : vector<2x128xf32>
    %292 = math.exp %291 : vector<2x128xf32>
    %cst_49 = arith.constant 1.000000e+00 : f32
    %293 = vector.broadcast %cst_49 : f32 to vector<2x128xf32>
    %294 = arith.addf %293, %292 : vector<2x128xf32>
    %295 = arith.divf %293, %294 : vector<2x128xf32>
    %296 = math.tanh %290 : vector<2x128xf32>
    %297 = vector.extract_strided_slice %295 {offsets = [0, 0], sizes = [2, 32], strides = [1, 1]} : vector<2x128xf32> to vector<2x32xf32>
    %298 = vector.extract_strided_slice %295 {offsets = [0, 32], sizes = [2, 32], strides = [1, 1]} : vector<2x128xf32> to vector<2x32xf32>
    %299 = vector.extract_strided_slice %296 {offsets = [0, 64], sizes = [2, 32], strides = [1, 1]} : vector<2x128xf32> to vector<2x32xf32>
    %300 = vector.extract_strided_slice %295 {offsets = [0, 96], sizes = [2, 32], strides = [1, 1]} : vector<2x128xf32> to vector<2x32xf32>
    %301 = arith.mulf %298, %285 : vector<2x32xf32>
    %302 = arith.mulf %297, %299 : vector<2x32xf32>
    %303 = arith.addf %301, %302 : vector<2x32xf32>
    %304 = math.tanh %303 : vector<2x32xf32>
    %305 = arith.mulf %300, %304 : vector<2x32xf32>
    %306 = tpu.concatenate %179, %197, %215, %233, %251, %269, %287, %305 in 0 : vector<2x32xf32>, vector<2x32xf32>, vector<2x32xf32>, vector<2x32xf32>, vector<2x32xf32>, vector<2x32xf32>, vector<2x32xf32>, vector<2x32xf32> -> vector<16x32xf32>
    %307 = vector.extract_strided_slice %306 {offsets = [13, 0], sizes = [1, 32], strides = [1, 1]} : vector<16x32xf32> to vector<1x32xf32>
    %308 = vector.extract_strided_slice %306 {offsets = [15, 0], sizes = [1, 32], strides = [1, 1]} : vector<16x32xf32> to vector<1x32xf32>
    %309 = tpu.concatenate %307, %308 in 0 : vector<1x32xf32>, vector<1x32xf32> -> vector<2x32xf32>
    %c0_50 = arith.constant 0 : index
    %c0_51 = arith.constant 0 : index
    %310 = vector.load %arg7[%c0_50, %c0_51] : memref<32x4xf32, #tpu.memory_space<vmem>>, vector<32x4xf32>
    %cst_52 = arith.constant dense<0.000000e+00> : vector<2x4xf32>
    %311 = tpu.matmul %309, %310, %cst_52 {dimension_numbers = #tpu.dot_dimension_numbers<[1], [0], [0], [1], [0, 0, 1, 1], [], []>} : vector<2x32xf32>, vector<32x4xf32>, vector<2x4xf32> -> vector<2x4xf32>
    %c0_53 = arith.constant 0 : index
    %c0_54 = arith.constant 0 : index
    %312 = vector.load %arg8[%c0_53, %c0_54] : memref<1x4xf32, #tpu.memory_space<vmem>>, vector<1x4xf32>
    %313 = vector.broadcast %312 : vector<1x4xf32> to vector<2x4xf32>
    %314 = arith.addf %311, %313 : vector<2x4xf32>
    %c0_55 = arith.constant 0 : index
    %c0_56 = arith.constant 0 : index
    %315 = vector.load %arg9[%c0_55, %c0_56] : memref<2x4xf32, #tpu.memory_space<vmem>>, vector<2x4xf32>
    tpu.vector_store %arg9[%c0_55, %c0_56], %314 {strides = array<i32>} : memref<2x4xf32, #tpu.memory_space<vmem>>, vector<2x4xf32>,
    return
  }
}

</mosaic_0001>

<bundles_post_ra>
// kernel: model_forward.1
= control target key start
LH: loop header
LB: loop body
LE: loop exit
PB: predicated region body
PF: predicated region fallthrough
CT: control target
= control target key end

     0   :  { %14 = vsyncpa [#allocation3], 0  ;;  %s3067_s0 = inlined_call_operand.vmem [shape: f32[16,8], index: 0, kind: input, shape index: {}]   ;;  %s3068_s1 = inlined_call_operand.hbm [shape: f32[8,128], index: 1, kind: input, shape index: {}]   ;;  %s3069_s2 = inlined_call_operand.vmem [shape: f32[32,128], index: 2, kind: input, shape index: {}]   ;;  %s3070_s3 = inlined_call_operand.vmem [shape: f32[1,128], index: 3, kind: input, shape index: {}]   ;;  %s3071_s4 = inlined_call_operand.vmem [shape: f32[32,128], index: 4, kind: input, shape index: {}]   ;;  %s3072_s5 = inlined_call_operand.hbm [shape: f32[32,128], index: 5, kind: input, shape index: {}]   ;;  %s3073_s6 = inlined_call_operand.vmem [shape: f32[1,128], index: 6, kind: input, shape index: {}]   ;;  %s3074_s7 = inlined_call_operand.vmem [shape: f32[32,4], index: 7, kind: input, shape index: {}]   ;;  %s3075_s8 = inlined_call_operand.hbm [shape: f32[1,4], index: 8, kind: input, shape index: {}]   ;;  %s3076_s9 = inlined_call_operand.hbm [shape: f32[2,4], index: 9, kind: output, shape index: {}]  }
   0x1   :  { %15 = vsyncpa [#allocation6], 0 }
   0x2   :  { %16 = vsyncpa [#allocation4], 0  ;;  %s2630_s30 = smov [#allocation5]  }
   0x3   :  { %s40_s10 = sshll.u32 %s2630_s30, 4  ;;  %s41_s10 = int_to_ptr.vmem [resolvable:$true] %s40_s10 }
   0x4   :  { %s2552_s11 = scalar_lea.vmem %s41_s10, 512  ;;  %p2557_p1 = scmp.lt.s32.totalorder %s41_s10, %s41_s10 }
   0x5   :  { %p2553_p0 = scmp.ne.s32.totalorder %s41_s10, %s2552_s11  ;;  %p2558_p2 = scmp.lt.s32.totalorder %s2552_s11, %s2552_s11 }
   0x7   :  { %p2559_p3 = por %p2558_p2, %p2557_p1 }
   0x9   :  { %p2560_p4 = pnand %p2559_p3, %p2553_p0 }
   0xb   :  { %2563 = shalt.err (!%p2560_p4)
}
   0xc   :  { %s2631_s12 = smov 128   ;;  %s2632_s13 = smov 8  }
   0xd   :  { %46 = dma.hbm_to_vmem [thread:$0]  %s3072_s5, 512, %s41_s10, [#allocation6], %s2631_s12, %s2631_s12, %s2632_s13  }
   0xe   :  { %s2633_s16 = smov [#allocation2]   ;;  %s2634_s18 = smov [#allocation7]  }
   0xf   :  { %s25_s17 = sshll.u32 %s2633_s16, 4  ;;  %s57_s19 = sshll.u32 %s2634_s18, 4  ;;  %s26_s17 = int_to_ptr.vmem [resolvable:$true] %s25_s17  ;;  %s58_s19 = int_to_ptr.vmem [resolvable:$true] %s57_s19 }
  0x10   :  { %s2572_s20 = scalar_lea.vmem %s26_s17, 128  ;;  %p2577_p6 = scmp.lt.s32.totalorder %s26_s17, %s26_s17 }
  0x11   :  { %p2573_p5 = scmp.ne.s32.totalorder %s26_s17, %s2572_s20  ;;  %p2578_p7 = scmp.lt.s32.totalorder %s2572_s20, %s2572_s20 }
  0x13   :  { %p2579_p8 = por %p2578_p7, %p2577_p6 }
  0x15   :  { %p2580_p9 = pnand %p2579_p8, %p2573_p5 }
  0x17   :  { %2583 = shalt.err (!%p2580_p9)
}
  0x18   :  { %28 = dma.hbm_to_vmem [thread:$0]  %s3068_s1, 128, %s26_s17, [#allocation3]  }
  0x19   :  { %s2592_s23 = scalar_lea.vmem %s58_s19, 16  ;;  %s2596_s5 = scalar_lea.vmem %s58_s19, 32 }
  0x1a   :  { %p2593_p10 = scmp.ne.s32.totalorder %s58_s19, %s2592_s23  ;;  %p2597_p11 = scmp.lt.s32.totalorder %s58_s19, %s58_s19 }
  0x1b   :  { %p2598_p12 = scmp.lt.s32.totalorder %s2596_s5, %s2592_s23 }
  0x1d   :  { %p2599_p13 = por %p2598_p12, %p2597_p11 }
  0x1f   :  { %p2600_p0 = pnand %p2599_p13, %p2593_p10 }
  0x21   :  { %2603 = shalt.err (!%p2600_p0)
}
  0x22   :  { %60 = dma.hbm_to_vmem [thread:$0]  %s3075_s8, 16, %s58_s19, [#allocation6]  }
  0x23   :  { %2624 = dma.done.wait [#allocation3], 128  }
  0x24   :  { %2625 = vsyncadd [#allocation3], 4294967168 }
  0x25   :  { %2626 = dma.done.wait [#allocation6], 528  }
  0x26   :  { %2627 = vsyncadd [#allocation6], 4294966768  ;;  %v2635_v0 = vmov 0.0   ;;  %vm2636_vm0 = vmmov 0   ;;  %vm84_vm1 = vcmask 64512   ;;  %v76_v1 = vld [vmem:[#allocation2] sm:$0xff] }
  0x27   :  { %2208 = vmatprep.subr.mxu1 %v2635_v0  ;;  %2216 = vmatprep.mubr.msk.f32.mxu1 %vm2636_vm0, %v2635_v0  ;;  %v2705_v2 = vld [vmem:[%s3069_s2 + $0x18] sm:$0xff]  ;;  %v70_v3 = vld [vmem:[%s3067_s0] sm:$0xff]  ;;  %v71_v4 = vld [vmem:[%s3067_s0 + $0x8] sm:$0xff]  ;;  %s2637_s15 = smov 64   ;;  %vm166_vm2 = vcmask 261120   ;;  %vm1009_vm3 = vcmask 1041408  }
  0x28   :  { %2203 = vmatprep.subr.mxu0 %v76_v1  ;;  %2209 = vmatpush3.msra.mxu1 %v2705_v2  ;;  %v2717_v5 = vld [vmem:[%s3069_s2 + $0x10] sm:$0xff]  ;;  %v2723_v6 = vld [vmem:[%s3069_s2 + $0x8] sm:$0xff]  ;;  %v2731_v7 = vld [vmem:[%s3069_s2] sm:$0xff]  ;;  %vm1011_vm4 = vcmask 1043456   ;;  %vm1013_vm5 = vcmask 1045504   ;;  %vm1965_vm6 = vcmask 1040384  }
  0x29   :  { %2204 = vmatpush3.msra.mxu0 %v76_v1  ;;  %2205 = vmatprep.mubr.msk.f32.mxu0 %vm84_vm1, %v70_v3  ;;  %v2071_v8 = vld [vmem:[%s3070_s3] ss:$0 sm:$0xff]  ;;  %s2638_s3 = smov 32   ;;  %vm2053_vm7 = vcmask 25600  }
  0x2a   :  { %2210 = vmatprep.subr.mxu1 %v2635_v0  ;;  %2206 = vmatmul.mubr.msk.f32.vlgmr.msra.gmra.mxu0 %vm84_vm1, %v71_v4 }
  0x2b   :  { %2211 = vmatpush3.msra.mxu1 %v2717_v5  ;;  %2219 = vmatprep.subr.mxu0 %v2635_v0 }
  0x2c   :  { %2212 = vmatprep.subr.mxu1 %v2635_v0  ;;  %2220 = vmatpush3.msra.mxu0 %v2705_v2 }
  0x2d   :  { %2213 = vmatpush3.msra.mxu1 %v2723_v6  ;;  %2221 = vmatprep.subr.mxu0 %v2635_v0 }
  0x2e   :  { %2214 = vmatprep.subr.mxu1 %v2635_v0  ;;  %2222 = vmatpush3.msra.mxu0 %v2717_v5 }
  0x2f   :  { %2215 = vmatpush3.msra.mxu1 %v2731_v7  ;;  %2223 = vmatprep.subr.mxu0 %v2635_v0 }
  0x30   :  { %2217 = vmatmul.mubr.f32.vlgmr.msra.gmra.mxu1 %v2635_v0  ;;  %2224 = vmatpush3.msra.mxu0 %v2723_v6 }
  0x31   :  { %2225 = vmatprep.subr.mxu0 %v2635_v0  ;;  %2227 = vmatprep.mubr.msk.f32.mxu0 %vm2636_vm0, %v2635_v0 }
  0x32   :  { %2226 = vmatpush3.msra.mxu0 %v2731_v7  ;;  %2230 = vmatprep.subr.mxu1 %v2635_v0 }
  0x33   :  { %2231 = vmatpush3.msra.mxu1 %v2705_v2  ;;  %2238 = vmatprep.mubr.msk.f32.mxu1 %vm2636_vm0, %v2635_v0 }
  0x34   :  { %2232 = vmatprep.subr.mxu1 %v2635_v0  ;;  %2241 = vmatprep.subr.mxu0 %v2635_v0 }
  0x35   :  { %2233 = vmatpush3.msra.mxu1 %v2717_v5 }
  0x36   :  { %2234 = vmatprep.subr.mxu1 %v2635_v0 }
  0x37   :  { %2235 = vmatpush3.msra.mxu1 %v2723_v6 }
  0x38   :  { %2236 = vmatprep.subr.mxu1 %v2635_v0 }
  0x39   :  { %2237 = vmatpush3.msra.mxu1 %v2731_v7 }
  0x3a   :  { %2252 = vmatprep.subr.mxu1 %v2635_v0 }
  0xea   :  { %v2207_v9 = vpop.f32.mrf.mxu0 }
  0xeb   :  { %v2761_v10 = vadd.f32 %v2207_v9, %v2071_v8 }
  0xec   :  { %v157_v11 = vpop.f32.mrf.mxu0 }
  0xed   :  { %v2763_v12 = vadd.f32 %v2071_v8, %v157_v11 }
  0xf0   :  { %v236_v13 = vpop.f32.mrf.mxu1 }
  0xf1   :  { %v240_v14 = vadd.f32 %v236_v13, %v2763_v12 }
  0xf2   :  { %v2218_v15 = vpop.f32.mrf.mxu1 }
  0xf3   :  { %2416 = vtanh.f32 %v240_v14  ;;  %v2074_v17 = vmul.f32 -1.442695, %v240_v14 }
  0xf5   :  { %2418 = vpow2.f32 %v2074_v17 }
 0x100   :  { %v2417_v16 = vpop.eup %2416 }
 0x101   :  { %250 = vrot.lane.b32.xlu0 %v2417_v16, %s2637_s15 }
 0x102   :  { %v2419_v18 = vpop.eup %2418 }
 0x103   :  { %v244_v19 = vadd.f32 1.0, %v2419_v18 }
 0x105   :  { %2420 = vrcp.f32 %v244_v19 }
 0x112   :  { %v2421_v20 = vpop.eup %2420 }
 0x113   :  { %v248_v23 = vmul.f32 0.0, %v2421_v20 }
 0x173   :  { %v251_v21 = vpop.permute.xlu0 %250 }
 0x174   :  { %v253_v22 = vmul.f32 %v2421_v20, %v251_v21 }
 0x176   :  { %255 = vrot.lane.b32.xlu0 %v253_v22, %s2638_s3 }
 0x1e8   :  { %v256_v24 = vpop.permute.xlu0 %255 }
 0x1e9   :  { %v258_v25 = vadd.f32 %v256_v24, %v248_v23 }
 0x1eb   :  { %2422 = vtanh.f32 %v258_v25  ;;  %v352_v41 = vrot.slane %v258_v25, 6 }
 0x1f8   :  { %v2423_v26 = vpop.eup %2422 }
 0x1f9   :  { %261 = vrot.lane.b32.xlu1 %v2423_v26, %s2637_s15 }
 0x26b   :  { %v262_v27 = vpop.permute.xlu1 %261 }
 0x26c   :  { %v2769_v28 = vmul.f32 %v2421_v20, %v262_v27 }
 0x26e   :  { %266 = vrot.lane.b32.xlu1 %v2769_v28, %s2638_s3 }
 0x2e0   :  { %v267_v29 = vpop.permute.xlu1 %266 }
 0x2e1   :  { %2228 = vmatmul.mubr.msk.f32.vlgmr.msra.gmra.mxu0 %vm166_vm2, %v267_v29 }
 0x2e2   :  { %2242 = vmatpush3.msra.mxu0 %v2705_v2  ;;  %2249 = vmatprep.mubr.msk.f32.mxu0 %vm2636_vm0, %v2635_v0 }
 0x2e3   :  { %2243 = vmatprep.subr.mxu0 %v2635_v0 }
 0x2e4   :  { %2244 = vmatpush3.msra.mxu0 %v2717_v5 }
 0x2e5   :  { %2245 = vmatprep.subr.mxu0 %v2635_v0 }
 0x2e6   :  { %2246 = vmatpush3.msra.mxu0 %v2723_v6 }
 0x2e7   :  { %2247 = vmatprep.subr.mxu0 %v2635_v0 }
 0x2e8   :  { %2248 = vmatpush3.msra.mxu0 %v2731_v7 }
 0x2e9   :  { %2263 = vmatprep.subr.mxu0 %v2635_v0 }
 0x3a1   :  { %v336_v30 = vpop.f32.mrf.mxu0 }
 0x3a2   :  { %v341_v31 = vrot.slane %v336_v30, 6 }
 0x3a3   :  { %v2229_v32 = vpop.f32.mrf.mxu0 }
 0x3a4   :  { %v343_v33 = vadd.f32 %v341_v31, %v2763_v12 }
 0x3a6   :  { %2424 = vtanh.f32 %v343_v33  ;;  %v2076_v35 = vmul.f32 -1.442695, %v343_v33 }
 0x3a8   :  { %2426 = vpow2.f32 %v2076_v35 }
 0x3b3   :  { %v2425_v34 = vpop.eup %2424 }
 0x3b4   :  { %356 = vrot.lane.b32.xlu0 %v2425_v34, %s2637_s15 }
 0x3b5   :  { %v2427_v36 = vpop.eup %2426 }
 0x3b6   :  { %v347_v37 = vadd.f32 1.0, %v2427_v36 }
 0x3b8   :  { %2428 = vrcp.f32 %v347_v37 }
 0x3c5   :  { %v2429_v38 = vpop.eup %2428 }
 0x3c6   :  { %v354_v42 = vmul.f32 %v2429_v38, %v352_v41 }
 0x426   :  { %v357_v39 = vpop.permute.xlu0 %356 }
 0x427   :  { %v359_v40 = vmul.f32 %v2429_v38, %v357_v39 }
 0x429   :  { %361 = vrot.lane.b32.xlu1 %v359_v40, %s2638_s3 }
 0x49b   :  { %v362_v43 = vpop.permute.xlu1 %361 }
 0x49c   :  { %v364_v44 = vadd.f32 %v362_v43, %v354_v42 }
 0x49e   :  { %2430 = vtanh.f32 %v364_v44  ;;  %v459_v61 = vrot.slane %v364_v44, 6 }
 0x4ab   :  { %v2431_v45 = vpop.eup %2430 }
 0x4ac   :  { %367 = vrot.lane.b32.xlu0 %v2431_v45, %s2637_s15 }
 0x51e   :  { %v368_v46 = vpop.permute.xlu0 %367 }
 0x51f   :  { %v370_v47 = vmul.f32 %v2429_v38, %v368_v46 }
 0x521   :  { %v372_v48 = vrot.slane %v370_v47, 2  ;;  %v1010_v9 = vsel %vm1009_vm3, %v2769_v28, %v370_v47 }
 0x523   :  { %373 = vrot.lane.b32.xlu1 %v372_v48, %s2638_s3 }
 0x595   :  { %v374_v49 = vpop.permute.xlu1 %373 }
 0x596   :  { %2239 = vmatmul.mubr.msk.f32.vlgmr.msra.gmra.mxu1 %vm166_vm2, %v374_v49 }
 0x597   :  { %2253 = vmatpush3.msra.mxu1 %v2705_v2  ;;  %2260 = vmatprep.mubr.msk.f32.mxu1 %vm2636_vm0, %v2635_v0 }
 0x598   :  { %2254 = vmatprep.subr.mxu1 %v2635_v0 }
 0x599   :  { %2255 = vmatpush3.msra.mxu1 %v2717_v5 }
 0x59a   :  { %2256 = vmatprep.subr.mxu1 %v2635_v0 }
 0x59b   :  { %2257 = vmatpush3.msra.mxu1 %v2723_v6 }
 0x59c   :  { %2258 = vmatprep.subr.mxu1 %v2635_v0 }
 0x59d   :  { %2259 = vmatpush3.msra.mxu1 %v2731_v7 }
 0x59e   :  { %2274 = vmatprep.subr.mxu1 %v2635_v0 }
 0x656   :  { %v443_v50 = vpop.f32.mrf.mxu1 }
 0x657   :  { %v448_v51 = vrot.slane %v443_v50, 4 }
 0x658   :  { %v2240_v52 = vpop.f32.mrf.mxu1 }
 0x659   :  { %v450_v53 = vadd.f32 %v448_v51, %v2763_v12 }
 0x65b   :  { %2432 = vtanh.f32 %v450_v53  ;;  %v2078_v55 = vmul.f32 -1.442695, %v450_v53 }
 0x65d   :  { %2434 = vpow2.f32 %v2078_v55 }
 0x668   :  { %v2433_v54 = vpop.eup %2432 }
 0x669   :  { %463 = vrot.lane.b32.xlu0 %v2433_v54, %s2637_s15 }
 0x66a   :  { %v2435_v56 = vpop.eup %2434 }
 0x66b   :  { %v454_v57 = vadd.f32 1.0, %v2435_v56 }
 0x66d   :  { %2436 = vrcp.f32 %v454_v57 }
 0x67a   :  { %v2437_v58 = vpop.eup %2436 }
 0x67b   :  { %v461_v62 = vmul.f32 %v2437_v58, %v459_v61 }
 0x6db   :  { %v464_v59 = vpop.permute.xlu0 %463 }
 0x6dc   :  { %v466_v60 = vmul.f32 %v2437_v58, %v464_v59 }
 0x6de   :  { %468 = vrot.lane.b32.xlu1 %v466_v60, %s2638_s3 }
 0x750   :  { %v469_v63 = vpop.permute.xlu1 %468 }
 0x751   :  { %v471_v1 = vadd.f32 %v469_v63, %v461_v62 }
 0x753   :  { %2438 = vtanh.f32 %v471_v1  ;;  %v566_v26 = vrot.slane %v471_v1, 6 }
 0x760   :  { %v2439_v3 = vpop.eup %2438 }
 0x761   :  { %474 = vrot.lane.b32.xlu0 %v2439_v3, %s2637_s15 }
 0x7d3   :  { %v475_v4 = vpop.permute.xlu0 %474 }
 0x7d4   :  { %v477_v8 = vmul.f32 %v2437_v58, %v475_v4 }
 0x7d6   :  { %v479_v11 = vrot.slane %v477_v8, 4  ;;  %v1012_v13 = vsel %vm1011_vm4, %v1010_v9, %v477_v8 }
 0x7d8   :  { %480 = vrot.lane.b32.xlu1 %v479_v11, %s2638_s3 }
 0x84a   :  { %v481_v14 = vpop.permute.xlu1 %480 }
 0x84b   :  { %2250 = vmatmul.mubr.msk.f32.vlgmr.msra.gmra.mxu0 %vm166_vm2, %v481_v14 }
 0x84c   :  { %2264 = vmatpush3.msra.mxu0 %v2705_v2  ;;  %2271 = vmatprep.mubr.msk.f32.mxu0 %vm2636_vm0, %v2635_v0 }
 0x84d   :  { %2265 = vmatprep.subr.mxu0 %v2635_v0 }
 0x84e   :  { %2266 = vmatpush3.msra.mxu0 %v2717_v5 }
 0x84f   :  { %2267 = vmatprep.subr.mxu0 %v2635_v0 }
 0x850   :  { %2268 = vmatpush3.msra.mxu0 %v2723_v6 }
 0x851   :  { %2269 = vmatprep.subr.mxu0 %v2635_v0 }
 0x852   :  { %2270 = vmatpush3.msra.mxu0 %v2731_v7 }
 0x853   :  { %2285 = vmatprep.subr.mxu0 %v2635_v0 }
 0x90b   :  { %v550_v15 = vpop.f32.mrf.mxu0 }
 0x90c   :  { %v555_v16 = vrot.slane %v550_v15, 2 }
 0x90d   :  { %v2251_v17 = vpop.f32.mrf.mxu0 }
 0x90e   :  { %v557_v18 = vadd.f32 %v555_v16, %v2763_v12 }
 0x910   :  { %2440 = vtanh.f32 %v557_v18  ;;  %v2080_v20 = vmul.f32 -1.442695, %v557_v18 }
 0x912   :  { %2442 = vpow2.f32 %v2080_v20 }
 0x91d   :  { %v2441_v19 = vpop.eup %2440 }
 0x91e   :  { %570 = vrot.lane.b32.xlu0 %v2441_v19, %s2637_s15 }
 0x91f   :  { %v2443_v21 = vpop.eup %2442 }
 0x920   :  { %v561_v22 = vadd.f32 1.0, %v2443_v21 }
 0x922   :  { %2444 = vrcp.f32 %v561_v22 }
 0x92f   :  { %v2445_v23 = vpop.eup %2444 }
 0x930   :  { %v568_v27 = vmul.f32 %v2445_v23, %v566_v26 }
 0x990   :  { %v571_v24 = vpop.permute.xlu0 %570 }
 0x991   :  { %v573_v25 = vmul.f32 %v2445_v23, %v571_v24 }
 0x993   :  { %575 = vrot.lane.b32.xlu1 %v573_v25, %s2638_s3 }
 0xa05   :  { %v576_v28 = vpop.permute.xlu1 %575 }
 0xa06   :  { %v578_v29 = vadd.f32 %v576_v28, %v568_v27 }
 0xa08   :  { %2446 = vtanh.f32 %v578_v29  ;;  %v670_v45 = vrot.slane %v578_v29, 6 }
 0xa15   :  { %v2447_v12 = vpop.eup %2446 }
 0xa16   :  { %581 = vrot.lane.b32.xlu0 %v2447_v12, %s2637_s15 }
 0xa88   :  { %v582_v30 = vpop.permute.xlu0 %581 }
 0xa89   :  { %v584_v31 = vmul.f32 %v2445_v23, %v582_v30 }
 0xa8b   :  { %v586_v32 = vrot.slane %v584_v31, 6  ;;  %v2824_v33 = vsel %vm1013_vm5, %v1012_v13, %v584_v31 }
 0xa8d   :  { %587 = vrot.lane.b32.xlu1 %v586_v32, %s2638_s3 }
 0xaff   :  { %v588_v34 = vpop.permute.xlu1 %587 }
 0xb00   :  { %2261 = vmatmul.mubr.msk.f32.vlgmr.msra.gmra.mxu1 %vm166_vm2, %v588_v34 }
 0xb01   :  { %2275 = vmatpush3.msra.mxu1 %v2705_v2  ;;  %2282 = vmatprep.mubr.msk.f32.mxu1 %vm2636_vm0, %v2635_v0 }
 0xb02   :  { %2276 = vmatprep.subr.mxu1 %v2635_v0 }
 0xb03   :  { %2277 = vmatpush3.msra.mxu1 %v2717_v5 }
 0xb04   :  { %2278 = vmatprep.subr.mxu1 %v2635_v0 }
 0xb05   :  { %2279 = vmatpush3.msra.mxu1 %v2723_v6 }
 0xb06   :  { %2280 = vmatprep.subr.mxu1 %v2635_v0 }
 0xb07   :  { %2281 = vmatpush3.msra.mxu1 %v2731_v7 }
 0xbc0   :  { %v657_v35 = vpop.f32.mrf.mxu1 }
 0xbc1   :  { %v661_v36 = vadd.f32 %v657_v35, %v2761_v10 }
 0xbc2   :  { %v2262_v37 = vpop.f32.mrf.mxu1 }
 0xbc3   :  { %2448 = vtanh.f32 %v661_v36  ;;  %v2082_v39 = vmul.f32 -1.442695, %v661_v36 }
 0xbc5   :  { %2450 = vpow2.f32 %v2082_v39 }
 0xbd0   :  { %v2449_v38 = vpop.eup %2448 }
 0xbd1   :  { %674 = vrot.lane.b32.xlu0 %v2449_v38, %s2637_s15 }
 0xbd2   :  { %v2451_v40 = vpop.eup %2450 }
 0xbd3   :  { %v665_v41 = vadd.f32 1.0, %v2451_v40 }
 0xbd5   :  { %2452 = vrcp.f32 %v665_v41 }
 0xbe2   :  { %v2453_v42 = vpop.eup %2452 }
 0xbe3   :  { %v672_v46 = vmul.f32 %v2453_v42, %v670_v45 }
 0xc43   :  { %v675_v43 = vpop.permute.xlu0 %674 }
 0xc44   :  { %v677_v44 = vmul.f32 %v2453_v42, %v675_v43 }
 0xc46   :  { %679 = vrot.lane.b32.xlu1 %v677_v44, %s2638_s3 }
 0xcb8   :  { %v680_v47 = vpop.permute.xlu1 %679 }
 0xcb9   :  { %v682_v48 = vadd.f32 %v680_v47, %v672_v46 }
 0xcbb   :  { %2454 = vtanh.f32 %v682_v48 }
 0xcc8   :  { %v2455_v49 = vpop.eup %2454 }
 0xcc9   :  { %685 = vrot.lane.b32.xlu0 %v2455_v49, %s2637_s15  ;;  %v1025_v49 = vld [vmem:[%s3071_s4 + $0x18] sm:$0xff] }
 0xcca   :  { %2296 = vmatprep.subr.mxu1 %v1025_v49 }
 0xd3b   :  { %v686_v50 = vpop.permute.xlu0 %685 }
 0xd3c   :  { %v2841_v51 = vmul.f32 %v2453_v42, %v686_v50  ;;  %v1024_v50 = vld [vmem:[%s3071_s4 + $0x10] sm:$0xff] }
 0xd3e   :  { %690 = vrot.lane.b32.xlu1 %v2841_v51, %s2638_s3 }
 0xdb0   :  { %v691_v52 = vpop.permute.xlu1 %690 }
 0xdb1   :  { %2272 = vmatmul.mubr.msk.f32.vlgmr.msra.gmra.mxu0 %vm166_vm2, %v691_v52  ;;  %v1023_v52 = vld [vmem:[%s3071_s4 + $0x8] sm:$0xff] }
 0xdb2   :  { %2286 = vmatpush3.msra.mxu0 %v2705_v2  ;;  %2293 = vmatprep.mubr.msk.f32.mxu0 %vm2636_vm0, %v2635_v0 }
 0xdb3   :  { %2287 = vmatprep.subr.mxu0 %v2635_v0 }
 0xdb4   :  { %2288 = vmatpush3.msra.mxu0 %v2717_v5 }
 0xdb5   :  { %2289 = vmatprep.subr.mxu0 %v2635_v0 }
 0xdb6   :  { %2290 = vmatpush3.msra.mxu0 %v2723_v6 }
 0xdb7   :  { %2291 = vmatprep.subr.mxu0 %v2635_v0 }
 0xdb8   :  { %2292 = vmatpush3.msra.mxu0 %v2731_v7  ;;  %v776_v7 = vrot.slane %v682_v48, 6 }
 0xdb9   :  { %2307 = vmatprep.subr.mxu0 %v2635_v0 }
 0xe71   :  { %v760_v53 = vpop.f32.mrf.mxu0 }
 0xe72   :  { %v765_v54 = vrot.slane %v760_v53, 6  ;;  %v2896_v53 = vld [vmem:[#allocation5 + $0x8] sm:$0xff] }
 0xe73   :  { %v2273_v2 = vpop.f32.mrf.mxu0 }
 0xe74   :  { %v767_v55 = vadd.f32 %v765_v54, %v2761_v10  ;;  %v1022_v54 = vld [vmem:[%s3071_s4] sm:$0xff] }
 0xe76   :  { %2456 = vtanh.f32 %v767_v55  ;;  %v2084_v5 = vmul.f32 -1.442695, %v767_v55  ;;  %v2907_v55 = vld [vmem:[#allocation5] sm:$0xff] }
 0xe78   :  { %2458 = vpow2.f32 %v2084_v5 }
 0xe83   :  { %v2457_v56 = vpop.eup %2456 }
 0xe84   :  { %780 = vrot.lane.b32.xlu0 %v2457_v56, %s2637_s15 }
 0xe85   :  { %v2459_v57 = vpop.eup %2458 }
 0xe86   :  { %v771_v58 = vadd.f32 1.0, %v2459_v57 }
 0xe88   :  { %2460 = vrcp.f32 %v771_v58 }
 0xe95   :  { %v2461_v6 = vpop.eup %2460 }
 0xe96   :  { %v778_v61 = vmul.f32 %v2461_v6, %v776_v7 }
 0xef6   :  { %v781_v59 = vpop.permute.xlu0 %780 }
 0xef7   :  { %v783_v60 = vmul.f32 %v2461_v6, %v781_v59 }
 0xef9   :  { %785 = vrot.lane.b32.xlu1 %v783_v60, %s2638_s3  ;;  %v2089_v60 = vld [vmem:[%s3073_s6] ss:$0 sm:$0xff] }
 0xf6b   :  { %v786_v62 = vpop.permute.xlu1 %785 }
 0xf6c   :  { %v788_v63 = vadd.f32 %v786_v62, %v778_v61 }
 0xf6e   :  { %2462 = vtanh.f32 %v788_v63  ;;  %v883_v23 = vrot.slane %v788_v63, 6 }
 0xf7b   :  { %v2463_v1 = vpop.eup %2462 }
 0xf7c   :  { %791 = vrot.lane.b32.xlu0 %v2463_v1, %s2637_s15 }
 0xfee   :  { %v792_v3 = vpop.permute.xlu0 %791 }
 0xfef   :  { %v794_v4 = vmul.f32 %v2461_v6, %v792_v3 }
 0xff1   :  { %v796_v8 = vrot.slane %v794_v4, 2  ;;  %v1015_v12 = vsel %vm1009_vm3, %v2841_v51, %v794_v4  ;;  %v2887_v51 = vld [vmem:[#allocation5 + $0x18] sm:$0xff] }
 0xff3   :  { %797 = vrot.lane.b32.xlu1 %v796_v8, %s2638_s3 }
0x1065   :  { %v798_v9 = vpop.permute.xlu1 %797 }
0x1066   :  { %2283 = vmatmul.mubr.msk.f32.vlgmr.msra.gmra.mxu1 %vm166_vm2, %v798_v9 }
0x1067   :  { %2297 = vmatpush3.msra.mxu1 %v1025_v49 }
0x1068   :  { %2298 = vmatprep.subr.mxu1 %v1024_v50 }
0x1069   :  { %2299 = vmatpush3.msra.mxu1 %v1024_v50 }
0x106a   :  { %2300 = vmatprep.subr.mxu1 %v1023_v52 }
0x106b   :  { %2301 = vmatpush3.msra.mxu1 %v1023_v52 }
0x106c   :  { %2302 = vmatprep.subr.mxu1 %v1022_v54 }
0x106d   :  { %2303 = vmatpush3.msra.mxu1 %v1022_v54 }
0x106e   :  { %2318 = vmatprep.subr.mxu1 %v2635_v0 }
0x1126   :  { %v867_v11 = vpop.f32.mrf.mxu1 }
0x1127   :  { %v872_v13 = vrot.slane %v867_v11, 4 }
0x1128   :  { %v2284_v14 = vpop.f32.mrf.mxu1 }
0x1129   :  { %v874_v15 = vadd.f32 %v872_v13, %v2761_v10 }
0x112b   :  { %2464 = vtanh.f32 %v874_v15  ;;  %v2086_v17 = vmul.f32 -1.442695, %v874_v15 }
0x112d   :  { %2466 = vpow2.f32 %v2086_v17 }
0x1138   :  { %v2465_v16 = vpop.eup %2464 }
0x1139   :  { %887 = vrot.lane.b32.xlu0 %v2465_v16, %s2637_s15 }
0x113a   :  { %v2467_v18 = vpop.eup %2466 }
0x113b   :  { %v878_v19 = vadd.f32 1.0, %v2467_v18 }
0x113d   :  { %2468 = vrcp.f32 %v878_v19 }
0x114a   :  { %v2469_v20 = vpop.eup %2468 }
0x114b   :  { %v885_v24 = vmul.f32 %v2469_v20, %v883_v23 }
0x11ab   :  { %v888_v21 = vpop.permute.xlu0 %887 }
0x11ac   :  { %v890_v22 = vmul.f32 %v2469_v20, %v888_v21 }
0x11ae   :  { %892 = vrot.lane.b32.xlu1 %v890_v22, %s2638_s3 }
0x1220   :  { %v893_v25 = vpop.permute.xlu1 %892 }
0x1221   :  { %v895_v26 = vadd.f32 %v893_v25, %v885_v24 }
0x1223   :  { %2470 = vtanh.f32 %v895_v26  ;;  %v990_v45 = vrot.slane %v895_v26, 6 }
0x1230   :  { %v2471_v27 = vpop.eup %2470 }
0x1231   :  { %898 = vrot.lane.b32.xlu0 %v2471_v27, %s2637_s15 }
0x12a3   :  { %v899_v28 = vpop.permute.xlu0 %898 }
0x12a4   :  { %v901_v29 = vmul.f32 %v2469_v20, %v899_v28 }
0x12a6   :  { %v903_v30 = vrot.slane %v901_v29, 4  ;;  %v2869_v31 = vsel %vm1011_vm4, %v1015_v12, %v901_v29 }
0x12a8   :  { %904 = vrot.lane.b32.xlu1 %v903_v30, %s2638_s3 }
0x131a   :  { %v905_v32 = vpop.permute.xlu1 %904 }
0x131b   :  { %2294 = vmatmul.mubr.msk.f32.vlgmr.msra.gmra.mxu0 %vm166_vm2, %v905_v32 }
0x131c   :  { %2315 = vmatprep.mubr.msk.f32.mxu0 %vm2636_vm0, %v2635_v0  ;;  %2308 = vmatpush3.msra.mxu0 %v2887_v51 }
0x131d   :  { %2309 = vmatprep.subr.mxu0 %v2635_v0 }
0x13db   :  { %v974_v34 = vpop.f32.mrf.mxu0 }
0x13dc   :  { %v979_v35 = vrot.slane %v974_v34, 2 }
0x13dd   :  { %v2295_v36 = vpop.f32.mrf.mxu0 }
0x13de   :  { %v981_v37 = vadd.f32 %v979_v35, %v2761_v10 }
0x13e0   :  { %2472 = vtanh.f32 %v981_v37  ;;  %v2088_v39 = vmul.f32 -1.442695, %v981_v37 }
0x13e2   :  { %2474 = vpow2.f32 %v2088_v39 }
0x13ed   :  { %v2473_v38 = vpop.eup %2472 }
0x13ee   :  { %994 = vrot.lane.b32.xlu0 %v2473_v38, %s2637_s15 }
0x13ef   :  { %v2475_v40 = vpop.eup %2474 }
0x13f0   :  { %v985_v41 = vadd.f32 1.0, %v2475_v40 }
0x13f2   :  { %2476 = vrcp.f32 %v985_v41 }
0x13ff   :  { %v2477_v42 = vpop.eup %2476 }
0x1400   :  { %v992_v46 = vmul.f32 %v2477_v42, %v990_v45 }
0x1460   :  { %v995_v43 = vpop.permute.xlu0 %994 }
0x1461   :  { %v997_v44 = vmul.f32 %v2477_v42, %v995_v43 }
0x1463   :  { %999 = vrot.lane.b32.xlu1 %v997_v44, %s2638_s3 }
0x1467   :  { %1035 = vrot.lane.b32.xlu1 %v2824_v33, %s2638_s3  ;;  %v2890_v33 = vld [vmem:[#allocation5 + $0x10] sm:$0xff] }
0x1468   :  { %2310 = vmatpush3.msra.mxu0 %v2890_v33 }
0x1469   :  { %2311 = vmatprep.subr.mxu0 %v2635_v0 }
0x146a   :  { %2312 = vmatpush3.msra.mxu0 %v2896_v53 }
0x146b   :  { %2313 = vmatprep.subr.mxu0 %v2635_v0 }
0x146c   :  { %2314 = vmatpush3.msra.mxu0 %v2907_v55 }
0x146d   :  { %2316 = vmatmul.mubr.f32.vlgmr.msra.gmra.mxu0 %v2635_v0  ;;  %2329 = vmatprep.subr.mxu0 %v2635_v0 }
0x146e   :  { %2330 = vmatpush3.msra.mxu0 %v2887_v51  ;;  %2337 = vmatprep.mubr.msk.f32.mxu0 %vm2636_vm0, %v2635_v0 }
0x146f   :  { %2331 = vmatprep.subr.mxu0 %v2635_v0 }
0x1470   :  { %2332 = vmatpush3.msra.mxu0 %v2890_v33 }
0x1471   :  { %2333 = vmatprep.subr.mxu0 %v2635_v0 }
0x1472   :  { %2334 = vmatpush3.msra.mxu0 %v2896_v53 }
0x1473   :  { %2335 = vmatprep.subr.mxu0 %v2635_v0 }
0x1474   :  { %2336 = vmatpush3.msra.mxu0 %v2907_v55 }
0x1475   :  { %2351 = vmatprep.subr.mxu0 %v2635_v0 }
0x14d5   :  { %v1000_v10 = vpop.permute.xlu1 %999 }
0x14d6   :  { %v1002_v47 = vadd.f32 %v1000_v10, %v992_v46 }
0x14d8   :  { %2478 = vtanh.f32 %v1002_v47 }
0x14d9   :  { %v1036_v48 = vpop.permute.xlu1 %1035 }
0x14da   :  { %2304 = vmatprep.mubr.msk.f32.mxu1 %vm166_vm2, %v1036_v48 }
0x14e5   :  { %v2479_v2 = vpop.eup %2478 }
0x14e6   :  { %1005 = vrot.lane.b32.xlu0 %v2479_v2, %s2637_s15 }
0x152d   :  { %v1184_v6 = vpop.f32.mrf.mxu0 }
0x152f   :  { %v2317_v59 = vpop.f32.mrf.mxu0 }
0x1558   :  { %v1006_v56 = vpop.permute.xlu0 %1005 }
0x1559   :  { %v1008_v5 = vmul.f32 %v2477_v42, %v1006_v56 }
0x155b   :  { %v1017_v57 = vsel %vm1013_vm5, %v2869_v31, %v1008_v5 }
0x155c   :  { %1037 = vrot.lane.b32.xlu0 %v1017_v57, %s2638_s3 }
0x15ce   :  { %v1038_v58 = vpop.permute.xlu0 %1037 }
0x15cf   :  { %2305 = vmatmul.mubr.msk.f32.vlgmr.msra.gmra.mxu1 %vm166_vm2, %v1038_v58 }
0x15d0   :  { %2319 = vmatpush3.msra.mxu1 %v2887_v51  ;;  %2326 = vmatprep.mubr.msk.f32.mxu1 %vm2636_vm0, %v2635_v0 }
0x15d1   :  { %2320 = vmatprep.subr.mxu1 %v2635_v0 }
0x15d2   :  { %2321 = vmatpush3.msra.mxu1 %v2890_v33 }
0x15d3   :  { %2322 = vmatprep.subr.mxu1 %v2635_v0 }
0x15d4   :  { %2323 = vmatpush3.msra.mxu1 %v2896_v53 }
0x15d5   :  { %2324 = vmatprep.subr.mxu1 %v2635_v0 }
0x15d6   :  { %2325 = vmatpush3.msra.mxu1 %v2907_v55 }
0x15d7   :  { %2340 = vmatprep.subr.mxu1 %v2635_v0 }
0x168f   :  { %v2306_v7 = vpop.f32.mrf.mxu1 }
0x1690   :  { %v2939_v61 = vadd.f32 %v2306_v7, %v2089_v60 }
0x1691   :  { %v1109_v62 = vpop.f32.mrf.mxu1 }
0x1692   :  { %v2941_v63 = vadd.f32 %v2089_v60, %v1109_v62 }
0x1694   :  { %v1188_v1 = vadd.f32 %v1184_v6, %v2941_v63 }
0x1696   :  { %2480 = vtanh.f32 %v1188_v1  ;;  %v2092_v4 = vmul.f32 -1.442695, %v1188_v1 }
0x1698   :  { %2482 = vpow2.f32 %v2092_v4 }
0x16a3   :  { %v2481_v3 = vpop.eup %2480 }
0x16a4   :  { %1198 = vrot.lane.b32.xlu1 %v2481_v3, %s2637_s15 }
0x16a5   :  { %v2483_v8 = vpop.eup %2482 }
0x16a6   :  { %v1192_v9 = vadd.f32 1.0, %v2483_v8 }
0x16a8   :  { %2484 = vrcp.f32 %v1192_v9 }
0x16b5   :  { %v2485_v11 = vpop.eup %2484 }
0x16b6   :  { %v1196_v15 = vmul.f32 0.0, %v2485_v11 }
0x1716   :  { %v1199_v13 = vpop.permute.xlu1 %1198 }
0x1717   :  { %v1201_v14 = vmul.f32 %v2485_v11, %v1199_v13 }
0x1719   :  { %1203 = vrot.lane.b32.xlu0 %v1201_v14, %s2638_s3 }
0x178b   :  { %v1204_v16 = vpop.permute.xlu0 %1203 }
0x178c   :  { %v1206_v17 = vadd.f32 %v1204_v16, %v1196_v15 }
0x178e   :  { %2486 = vtanh.f32 %v1206_v17  ;;  %v1300_v32 = vrot.slane %v1206_v17, 6 }
0x179b   :  { %v2487_v18 = vpop.eup %2486 }
0x179c   :  { %1209 = vrot.lane.b32.xlu1 %v2487_v18, %s2637_s15 }
0x180e   :  { %v1210_v19 = vpop.permute.xlu1 %1209 }
0x180f   :  { %v1212_v20 = vmul.f32 %v2485_v11, %v1210_v19 }
0x1811   :  { %1214 = vrot.lane.b32.xlu0 %v1212_v20, %s2638_s3 }
0x1883   :  { %v1215_v21 = vpop.permute.xlu0 %1214 }
0x1884   :  { %2327 = vmatmul.mubr.msk.f32.vlgmr.msra.gmra.mxu1 %vm166_vm2, %v1215_v21 }
0x1885   :  { %2341 = vmatpush3.msra.mxu1 %v2887_v51  ;;  %2348 = vmatprep.mubr.msk.f32.mxu1 %vm2636_vm0, %v2635_v0 }
0x1886   :  { %2342 = vmatprep.subr.mxu1 %v2635_v0 }
0x1887   :  { %2343 = vmatpush3.msra.mxu1 %v2890_v33 }
0x1888   :  { %2344 = vmatprep.subr.mxu1 %v2635_v0 }
0x1889   :  { %2345 = vmatpush3.msra.mxu1 %v2896_v53 }
0x188a   :  { %2346 = vmatprep.subr.mxu1 %v2635_v0 }
0x188b   :  { %2347 = vmatpush3.msra.mxu1 %v2907_v55 }
0x188c   :  { %2362 = vmatprep.subr.mxu1 %v2635_v0 }
0x1944   :  { %v1284_v22 = vpop.f32.mrf.mxu1 }
0x1945   :  { %v1289_v23 = vrot.slane %v1284_v22, 6 }
0x1946   :  { %v2328_v24 = vpop.f32.mrf.mxu1 }
0x1947   :  { %v1291_v25 = vadd.f32 %v1289_v23, %v2941_v63 }
0x1949   :  { %2488 = vtanh.f32 %v1291_v25  ;;  %v2094_v27 = vmul.f32 -1.442695, %v1291_v25 }
0x194b   :  { %2490 = vpow2.f32 %v2094_v27 }
0x1956   :  { %v2489_v26 = vpop.eup %2488 }
0x1957   :  { %1304 = vrot.lane.b32.xlu1 %v2489_v26, %s2637_s15 }
0x1958   :  { %v2491_v28 = vpop.eup %2490 }
0x1959   :  { %v1295_v29 = vadd.f32 1.0, %v2491_v28 }
0x195b   :  { %2492 = vrcp.f32 %v1295_v29 }
0x1968   :  { %v2493_v12 = vpop.eup %2492 }
0x1969   :  { %v1302_v34 = vmul.f32 %v2493_v12, %v1300_v32 }
0x19c9   :  { %v1305_v30 = vpop.permute.xlu1 %1304 }
0x19ca   :  { %v1307_v31 = vmul.f32 %v2493_v12, %v1305_v30 }
0x19cc   :  { %1309 = vrot.lane.b32.xlu0 %v1307_v31, %s2638_s3 }
0x1a3e   :  { %v1310_v35 = vpop.permute.xlu0 %1309 }
0x1a3f   :  { %v1312_v36 = vadd.f32 %v1310_v35, %v1302_v34 }
0x1a41   :  { %2494 = vtanh.f32 %v1312_v36  ;;  %v1407_v54 = vrot.slane %v1312_v36, 6 }
0x1a4e   :  { %v2495_v37 = vpop.eup %2494 }
0x1a4f   :  { %1315 = vrot.lane.b32.xlu1 %v2495_v37, %s2637_s15 }
0x1ac1   :  { %v1316_v38 = vpop.permute.xlu1 %1315 }
0x1ac2   :  { %v1318_v39 = vmul.f32 %v2493_v12, %v1316_v38 }
0x1ac4   :  { %v1320_v40 = vrot.slane %v1318_v39, 2 }
0x1ac6   :  { %1321 = vrot.lane.b32.xlu0 %v1320_v40, %s2638_s3 }
0x1b38   :  { %v1322_v41 = vpop.permute.xlu0 %1321 }
0x1b39   :  { %2338 = vmatmul.mubr.msk.f32.vlgmr.msra.gmra.mxu0 %vm166_vm2, %v1322_v41 }
0x1b3a   :  { %2352 = vmatpush3.msra.mxu0 %v2887_v51  ;;  %2359 = vmatprep.mubr.msk.f32.mxu0 %vm2636_vm0, %v2635_v0 }
0x1b3b   :  { %2353 = vmatprep.subr.mxu0 %v2635_v0 }
0x1b3c   :  { %2354 = vmatpush3.msra.mxu0 %v2890_v33 }
0x1b3d   :  { %2355 = vmatprep.subr.mxu0 %v2635_v0 }
0x1b3e   :  { %2356 = vmatpush3.msra.mxu0 %v2896_v53 }
0x1b3f   :  { %2357 = vmatprep.subr.mxu0 %v2635_v0 }
0x1b40   :  { %2358 = vmatpush3.msra.mxu0 %v2907_v55 }
0x1b41   :  { %2373 = vmatprep.subr.mxu0 %v2635_v0 }
0x1bf9   :  { %v1391_v42 = vpop.f32.mrf.mxu0 }
0x1bfa   :  { %v1396_v43 = vrot.slane %v1391_v42, 4 }
0x1bfb   :  { %v2339_v44 = vpop.f32.mrf.mxu0 }
0x1bfc   :  { %v1398_v45 = vadd.f32 %v1396_v43, %v2941_v63 }
0x1bfe   :  { %2496 = vtanh.f32 %v1398_v45  ;;  %v2096_v10 = vmul.f32 -1.442695, %v1398_v45 }
0x1c00   :  { %2498 = vpow2.f32 %v2096_v10 }
0x1c0b   :  { %v2497_v46 = vpop.eup %2496 }
0x1c0c   :  { %1411 = vrot.lane.b32.xlu1 %v2497_v46, %s2637_s15 }
0x1c0d   :  { %v2499_v47 = vpop.eup %2498 }
0x1c0e   :  { %v1402_v48 = vadd.f32 1.0, %v2499_v47 }
0x1c10   :  { %2500 = vrcp.f32 %v1402_v48 }
0x1c1d   :  { %v2501_v49 = vpop.eup %2500 }
0x1c1e   :  { %v1409_v2 = vmul.f32 %v2501_v49, %v1407_v54 }
0x1c7e   :  { %v1412_v50 = vpop.permute.xlu1 %1411 }
0x1c7f   :  { %v1414_v52 = vmul.f32 %v2501_v49, %v1412_v50 }
0x1c81   :  { %1416 = vrot.lane.b32.xlu0 %v1414_v52, %s2638_s3 }
0x1cf3   :  { %v1417_v56 = vpop.permute.xlu0 %1416 }
0x1cf4   :  { %v1419_v5 = vadd.f32 %v1417_v56, %v1409_v2 }
0x1cf6   :  { %2502 = vtanh.f32 %v1419_v5  ;;  %v1514_v16 = vrot.slane %v1419_v5, 6 }
0x1d03   :  { %v2503_v57 = vpop.eup %2502 }
0x1d04   :  { %1422 = vrot.lane.b32.xlu1 %v2503_v57, %s2637_s15 }
0x1d76   :  { %v1423_v58 = vpop.permute.xlu1 %1422 }
0x1d77   :  { %v1425_v6 = vmul.f32 %v2501_v49, %v1423_v58 }
0x1d79   :  { %v1427_v59 = vrot.slane %v1425_v6, 4 }
0x1d7b   :  { %1428 = vrot.lane.b32.xlu0 %v1427_v59, %s2638_s3 }
0x1ded   :  { %v1429_v60 = vpop.permute.xlu0 %1428 }
0x1dee   :  { %2349 = vmatmul.mubr.msk.f32.vlgmr.msra.gmra.mxu1 %vm166_vm2, %v1429_v60 }
0x1def   :  { %2363 = vmatpush3.msra.mxu1 %v2887_v51  ;;  %2370 = vmatprep.mubr.msk.f32.mxu1 %vm2636_vm0, %v2635_v0 }
0x1df0   :  { %2364 = vmatprep.subr.mxu1 %v2635_v0 }
0x1df1   :  { %2365 = vmatpush3.msra.mxu1 %v2890_v33 }
0x1df2   :  { %2366 = vmatprep.subr.mxu1 %v2635_v0 }
0x1df3   :  { %2367 = vmatpush3.msra.mxu1 %v2896_v53 }
0x1df4   :  { %2368 = vmatprep.subr.mxu1 %v2635_v0 }
0x1df5   :  { %2369 = vmatpush3.msra.mxu1 %v2907_v55 }
0x1df6   :  { %2384 = vmatprep.subr.mxu1 %v2635_v0 }
0x1eae   :  { %v1498_v7 = vpop.f32.mrf.mxu1 }
0x1eaf   :  { %v1503_v62 = vrot.slane %v1498_v7, 2 }
0x1eb0   :  { %v2350_v1 = vpop.f32.mrf.mxu1 }
0x1eb1   :  { %v1505_v3 = vadd.f32 %v1503_v62, %v2941_v63 }
0x1eb3   :  { %2504 = vtanh.f32 %v1505_v3  ;;  %v2098_v8 = vmul.f32 -1.442695, %v1505_v3 }
0x1eb5   :  { %2506 = vpow2.f32 %v2098_v8 }
0x1ec0   :  { %v2505_v4 = vpop.eup %2504 }
0x1ec1   :  { %1518 = vrot.lane.b32.xlu1 %v2505_v4, %s2637_s15 }
0x1ec2   :  { %v2507_v9 = vpop.eup %2506 }
0x1ec3   :  { %v1509_v11 = vadd.f32 1.0, %v2507_v9 }
0x1ec5   :  { %2508 = vrcp.f32 %v1509_v11 }
0x1ed2   :  { %v2509_v13 = vpop.eup %2508 }
0x1ed3   :  { %v1516_v17 = vmul.f32 %v2509_v13, %v1514_v16 }
0x1f33   :  { %v1519_v14 = vpop.permute.xlu1 %1518 }
0x1f34   :  { %v1521_v15 = vmul.f32 %v2509_v13, %v1519_v14 }
0x1f36   :  { %1523 = vrot.lane.b32.xlu0 %v1521_v15, %s2638_s3 }
0x1fa8   :  { %v1524_v18 = vpop.permute.xlu0 %1523 }
0x1fa9   :  { %v1526_v19 = vadd.f32 %v1524_v18, %v1516_v17 }
0x1fab   :  { %2510 = vtanh.f32 %v1526_v19  ;;  %v1618_v34 = vrot.slane %v1526_v19, 6 }
0x1fb8   :  { %v2511_v63 = vpop.eup %2510 }
0x1fb9   :  { %1529 = vrot.lane.b32.xlu1 %v2511_v63, %s2637_s15 }
0x202b   :  { %v1530_v20 = vpop.permute.xlu1 %1529 }
0x202c   :  { %v1532_v21 = vmul.f32 %v2509_v13, %v1530_v20 }
0x202e   :  { %v1534_v22 = vrot.slane %v1532_v21, 6 }
0x2030   :  { %1535 = vrot.lane.b32.xlu0 %v1534_v22, %s2638_s3 }
0x20a2   :  { %v1536_v23 = vpop.permute.xlu0 %1535 }
0x20a3   :  { %2360 = vmatmul.mubr.msk.f32.vlgmr.msra.gmra.mxu0 %vm166_vm2, %v1536_v23 }
0x20a4   :  { %2374 = vmatpush3.msra.mxu0 %v2887_v51  ;;  %2381 = vmatprep.mubr.msk.f32.mxu0 %vm2636_vm0, %v2635_v0 }
0x20a5   :  { %2375 = vmatprep.subr.mxu0 %v2635_v0 }
0x20a6   :  { %2376 = vmatpush3.msra.mxu0 %v2890_v33 }
0x20a7   :  { %2377 = vmatprep.subr.mxu0 %v2635_v0 }
0x20a8   :  { %2378 = vmatpush3.msra.mxu0 %v2896_v53 }
0x20a9   :  { %2379 = vmatprep.subr.mxu0 %v2635_v0 }
0x20aa   :  { %2380 = vmatpush3.msra.mxu0 %v2907_v55 }
0x20ab   :  { %2395 = vmatprep.subr.mxu0 %v2635_v0 }
0x2163   :  { %v1605_v24 = vpop.f32.mrf.mxu0 }
0x2164   :  { %v1609_v25 = vadd.f32 %v1605_v24, %v2939_v61 }
0x2165   :  { %v2361_v26 = vpop.f32.mrf.mxu0 }
0x2166   :  { %2512 = vtanh.f32 %v1609_v25  ;;  %v2100_v28 = vmul.f32 -1.442695, %v1609_v25 }
0x2168   :  { %2514 = vpow2.f32 %v2100_v28 }
0x2173   :  { %v2513_v27 = vpop.eup %2512 }
0x2174   :  { %1622 = vrot.lane.b32.xlu1 %v2513_v27, %s2637_s15 }
0x2175   :  { %v2515_v29 = vpop.eup %2514 }
0x2176   :  { %v1613_v12 = vadd.f32 1.0, %v2515_v29 }
0x2178   :  { %2516 = vrcp.f32 %v1613_v12 }
0x2185   :  { %v2517_v30 = vpop.eup %2516 }
0x2186   :  { %v1620_v35 = vmul.f32 %v2517_v30, %v1618_v34 }
0x21e6   :  { %v1623_v31 = vpop.permute.xlu1 %1622 }
0x21e7   :  { %v1625_v32 = vmul.f32 %v2517_v30, %v1623_v31 }
0x21e9   :  { %1627 = vrot.lane.b32.xlu0 %v1625_v32, %s2638_s3 }
0x225b   :  { %v1628_v36 = vpop.permute.xlu0 %1627 }
0x225c   :  { %v1630_v37 = vadd.f32 %v1628_v36, %v1620_v35 }
0x225e   :  { %2518 = vtanh.f32 %v1630_v37 }
0x226b   :  { %v2519_v38 = vpop.eup %2518 }
0x226c   :  { %1633 = vrot.lane.b32.xlu1 %v2519_v38, %s2637_s15  ;;  %v1968_v38 = vld [vmem:[%s3074_s7 + $0x8] sm:$0xff] }
0x22de   :  { %v1634_v39 = vpop.permute.xlu1 %1633 }
0x22df   :  { %v3011_v40 = vmul.f32 %v2517_v30, %v1634_v39  ;;  %v1967_v39 = vld [vmem:[%s3074_s7] sm:$0xff] }
0x22e1   :  { %1638 = vrot.lane.b32.xlu0 %v3011_v40, %s2638_s3 }
0x2353   :  { %v1639_v41 = vpop.permute.xlu0 %1638 }
0x2354   :  { %2371 = vmatmul.mubr.msk.f32.vlgmr.msra.gmra.mxu1 %vm166_vm2, %v1639_v41 }
0x2355   :  { %2385 = vmatpush3.msra.mxu1 %v2887_v51  ;;  %2392 = vmatprep.mubr.msk.f32.mxu1 %vm2636_vm0, %v2635_v0 }
0x2356   :  { %2386 = vmatprep.subr.mxu1 %v2635_v0 }
0x2357   :  { %2387 = vmatpush3.msra.mxu1 %v2890_v33 }
0x2358   :  { %2388 = vmatprep.subr.mxu1 %v2635_v0 }
0x2359   :  { %2389 = vmatpush3.msra.mxu1 %v2896_v53 }
0x235a   :  { %2390 = vmatprep.subr.mxu1 %v2635_v0 }
0x235b   :  { %2391 = vmatpush3.msra.mxu1 %v2907_v55  ;;  %v1724_v55 = vrot.slane %v1630_v37, 6  ;;  %v1969_v37 = vld [vmem:[%s3074_s7 + $0x10] sm:$0xff] }
0x2414   :  { %v1708_v42 = vpop.f32.mrf.mxu1 }
0x2415   :  { %v1713_v43 = vrot.slane %v1708_v42, 6 }
0x2416   :  { %v2372_v44 = vpop.f32.mrf.mxu1 }
0x2417   :  { %v1715_v51 = vadd.f32 %v1713_v43, %v2939_v61 }
0x2419   :  { %2520 = vtanh.f32 %v1715_v51  ;;  %v2102_v46 = vmul.f32 -1.442695, %v1715_v51 }
0x241b   :  { %2522 = vpow2.f32 %v2102_v46 }
0x2426   :  { %v2521_v45 = vpop.eup %2520 }
0x2427   :  { %1728 = vrot.lane.b32.xlu1 %v2521_v45, %s2637_s15 }
0x2428   :  { %v2523_v33 = vpop.eup %2522 }
0x2429   :  { %v1719_v10 = vadd.f32 1.0, %v2523_v33  ;;  %v2107_v33 = vld [vmem:[#allocation7] ss:$0 sm:$0xff] }
0x242b   :  { %2524 = vrcp.f32 %v1719_v10 }
0x2438   :  { %v2525_v47 = vpop.eup %2524 }
0x2439   :  { %v1726_v49 = vmul.f32 %v2525_v47, %v1724_v55 }
0x2499   :  { %v1729_v53 = vpop.permute.xlu1 %1728 }
0x249a   :  { %v1731_v48 = vmul.f32 %v2525_v47, %v1729_v53 }
0x249c   :  { %1733 = vrot.lane.b32.xlu0 %v1731_v48, %s2638_s3 }
0x250e   :  { %v1734_v50 = vpop.permute.xlu0 %1733 }
0x250f   :  { %v1736_v52 = vadd.f32 %v1734_v50, %v1726_v49 }
0x2511   :  { %2526 = vtanh.f32 %v1736_v52  ;;  %v1831_v11 = vrot.slane %v1736_v52, 6 }
0x251e   :  { %v2527_v54 = vpop.eup %2526 }
0x251f   :  { %1739 = vrot.lane.b32.xlu1 %v2527_v54, %s2637_s15 }
0x2591   :  { %v1740_v2 = vpop.permute.xlu1 %1739 }
0x2592   :  { %v1742_v56 = vmul.f32 %v2525_v47, %v1740_v2 }
0x2594   :  { %v1744_v5 = vrot.slane %v1742_v56, 2  ;;  %v1957_v19 = vsel %vm1009_vm3, %v3011_v40, %v1742_v56 }
0x2596   :  { %1745 = vrot.lane.b32.xlu0 %v1744_v5, %s2638_s3 }
0x2608   :  { %v1746_v57 = vpop.permute.xlu0 %1745 }
0x2609   :  { %2382 = vmatmul.mubr.msk.f32.vlgmr.msra.gmra.mxu0 %vm166_vm2, %v1746_v57 }
0x260a   :  { %2403 = vmatprep.mubr.msk.f32.mxu0 %vm2636_vm0, %v2635_v0 }
0x26c9   :  { %v1815_v58 = vpop.f32.mrf.mxu0 }
0x26ca   :  { %v1820_v6 = vrot.slane %v1815_v58, 4 }
0x26cb   :  { %v2383_v59 = vpop.f32.mrf.mxu0 }
0x26cc   :  { %v1822_v60 = vadd.f32 %v1820_v6, %v2939_v61 }
0x26ce   :  { %2528 = vtanh.f32 %v1822_v60  ;;  %v2104_v62 = vmul.f32 -1.442695, %v1822_v60 }
0x26d0   :  { %2530 = vpow2.f32 %v2104_v62 }
0x26db   :  { %v2529_v7 = vpop.eup %2528 }
0x26dc   :  { %1835 = vrot.lane.b32.xlu1 %v2529_v7, %s2637_s15 }
0x26dd   :  { %v2531_v1 = vpop.eup %2530 }
0x26de   :  { %v1826_v3 = vadd.f32 1.0, %v2531_v1 }
0x26e0   :  { %2532 = vrcp.f32 %v1826_v3 }
0x26ed   :  { %v2533_v4 = vpop.eup %2532 }
0x26ee   :  { %v1833_v13 = vmul.f32 %v2533_v4, %v1831_v11 }
0x274e   :  { %v1836_v8 = vpop.permute.xlu1 %1835 }
0x274f   :  { %v1838_v9 = vmul.f32 %v2533_v4, %v1836_v8 }
0x2751   :  { %1840 = vrot.lane.b32.xlu0 %v1838_v9, %s2638_s3 }
0x27c3   :  { %v1841_v14 = vpop.permute.xlu0 %1840 }
0x27c4   :  { %v1843_v15 = vadd.f32 %v1841_v14, %v1833_v13 }
0x27c6   :  { %2534 = vtanh.f32 %v1843_v15  ;;  %v1938_v32 = vrot.slane %v1843_v15, 6 }
0x27d3   :  { %v2535_v16 = vpop.eup %2534 }
0x27d4   :  { %1846 = vrot.lane.b32.xlu1 %v2535_v16, %s2637_s15 }
0x2846   :  { %v1847_v17 = vpop.permute.xlu1 %1846 }
0x2847   :  { %v1849_v18 = vmul.f32 %v2533_v4, %v1847_v17 }
0x2849   :  { %v1851_v63 = vrot.slane %v1849_v18, 4  ;;  %v1958_v20 = vsel %vm1011_vm4, %v1957_v19, %v1849_v18 }
0x284b   :  { %1852 = vrot.lane.b32.xlu0 %v1851_v63, %s2638_s3 }
0x28bd   :  { %v1853_v21 = vpop.permute.xlu0 %1852 }
0x28be   :  { %2393 = vmatmul.mubr.msk.f32.vlgmr.msra.gmra.mxu1 %vm166_vm2, %v1853_v21 }
0x297e   :  { %v1922_v22 = vpop.f32.mrf.mxu1 }
0x297f   :  { %v1927_v23 = vrot.slane %v1922_v22, 2 }
0x2980   :  { %v2394_v24 = vpop.f32.mrf.mxu1 }
0x2981   :  { %v1929_v25 = vadd.f32 %v1927_v23, %v2939_v61  ;;  %v1970_v61 = vld [vmem:[%s3074_s7 + $0x18] sm:$0xff]  ;;  %s2639_s7 = smov [#allocation8]  }
0x2982   :  { %2396 = vmatpush3.msra.mxu0 %v1970_v61  ;;  %s2061_s29 = sshll.u32 %s2639_s7, 4  ;;  %s2062_s29 = int_to_ptr.vmem [resolvable:$true] %s2061_s29 }
0x2983   :  { %2536 = vtanh.f32 %v1929_v25  ;;  %v2106_v27 = vmul.f32 -1.442695, %v1929_v25  ;;  %2397 = vmatprep.subr.mxu0 %v2635_v0  ;;  %s2604_s30 = scalar_lea.vmem %s2062_s29, 32  ;;  %p2609_p2 = scmp.lt.s32.totalorder %s2062_s29, %s2062_s29 }
0x2984   :  { %2398 = vmatpush3.msra.mxu0 %v1969_v37  ;;  %p2605_p1 = scmp.ne.s32.totalorder %s2062_s29, %s2604_s30  ;;  %p2610_p3 = scmp.lt.s32.totalorder %s2604_s30, %s2604_s30 }
0x2985   :  { %2538 = vpow2.f32 %v2106_v27  ;;  %2399 = vmatprep.subr.mxu0 %v2635_v0 }
0x2986   :  { %2400 = vmatpush3.msra.mxu0 %v1968_v38  ;;  %p2611_p4 = por %p2610_p3, %p2609_p2 }
0x2987   :  { %2401 = vmatprep.subr.mxu0 %v2635_v0 }
0x2988   :  { %2402 = vmatpush3.msra.mxu0 %v1967_v39  ;;  %p2612_p5 = pnand %p2611_p4, %p2605_p1 }
0x2990   :  { %v2537_v26 = vpop.eup %2536 }
0x2991   :  { %1942 = vrot.lane.b32.xlu1 %v2537_v26, %s2637_s15 }
0x2992   :  { %v2539_v28 = vpop.eup %2538 }
0x2993   :  { %v1933_v29 = vadd.f32 1.0, %v2539_v28 }
0x2995   :  { %2540 = vrcp.f32 %v1933_v29 }
0x29a2   :  { %v2541_v12 = vpop.eup %2540 }
0x29a3   :  { %v1940_v34 = vmul.f32 %v2541_v12, %v1938_v32 }
0x2a03   :  { %v1943_v30 = vpop.permute.xlu1 %1942 }
0x2a04   :  { %v1945_v31 = vmul.f32 %v2541_v12, %v1943_v30 }
0x2a06   :  { %1947 = vrot.lane.b32.xlu0 %v1945_v31, %s2638_s3 }
0x2a78   :  { %v1948_v35 = vpop.permute.xlu0 %1947 }
0x2a79   :  { %v1950_v36 = vadd.f32 %v1948_v35, %v1940_v34 }
0x2a7b   :  { %2542 = vtanh.f32 %v1950_v36 }
0x2a88   :  { %v2543_v40 = vpop.eup %2542 }
0x2a89   :  { %1953 = vrot.lane.b32.xlu1 %v2543_v40, %s2637_s15 }
0x2afb   :  { %v1954_v41 = vpop.permute.xlu1 %1953 }
0x2afc   :  { %v1956_v42 = vmul.f32 %v2541_v12, %v1954_v41 }
0x2afe   :  { %v1959_v43 = vsel %vm1013_vm5, %v1958_v20, %v1956_v42 }
0x2aff   :  { %v1961_v44 = vrot.slane %v1959_v43, 5  ;;  %v1963_v51 = vrot.slane %v1959_v43, 6 }
0x2b01   :  { %v1966_v45 = vsel %vm1965_vm6, %v1961_v44, %v1963_v51 }
0x2b02   :  { %1979 = vrot.lane.b32.xlu0 %v1966_v45, %s2638_s3 }
0x2b74   :  { %v1980_v46 = vpop.permute.xlu0 %1979 }
0x2b75   :  { %2404 = vmatmul.mubr.msk.f32.vlgmr.msra.gmra.mxu0 %vm166_vm2, %v1980_v46 }
0x2c35   :  { %v2049_v0 = vpop.f32.mrf.mxu0 }
0x2c36   :  { %v2050_v10 = vadd.f32 %v2107_v33, %v2049_v0 }
0x2c37   :  { %v2405_v47 = vpop.f32.mrf.mxu0 }
0x2c38   :  { %2054 = vst.msk [vmem:[#allocation8] sm:$0x3] %vm2053_vm7, %v2050_v10 }
0x2c39   :  { %2615 = shalt.err (!%p2612_p5)
}
0x2c3a   :  { %2064 = dma.vmem_to_hbm [thread:$0]  %s2062_s29, 32, %s3076_s9, [#allocation4]  }
0x2c3b   :  { %2628 = dma.done.wait [#allocation4], 32  }
0x2c3c   :  { %2629 = vsyncadd [#allocation4], 4294967264 }
0x2c3d   :  { %2068 = vsyncpa [#allocation3], 1 }
0x2c3e   :  { %2069 = vsyncpa [#allocation6], 1 }
0x2c3f   :  { %2070 = vsyncpa [#allocation4], 1 }

</bundles_post_ra>
